<compile_context>
chip_gen: v7x
topology: tpu7x:2x2x1
jax: 0.10.0
libtpu: 0.0.40
codegen_flags: <defaults>
</compile_context>

<pallas_src>
import functools

import jax
import jax.numpy as jnp
from jax.experimental import pallas as pl
from jax.experimental.pallas import tpu as pltpu


def _round_up(x, m):
    return (x + m - 1) // m * m


def _cdiv(a, b):
    return -(-a // b)


def _vmem_cap_bytes():
    """Chip-aware VMEM ceiling with headroom (v7x has only 64 MiB / core)."""
    try:
        cap = int(pltpu.get_tpu_info().vmem_capacity_bytes)
    except Exception:
        cap = 64 * 1024 * 1024          # conservative (v7x) assumption
    return max(32 * 1024 * 1024, cap * 3 // 4)


def conv_module_kernel(xp_ref, xc_ref, xn_ref, pw1_w_ref, pw1_b_ref, dwp_ref,
                       pw2_w_ref, o_ref, y_ref, *, kernel_size, tt, halo,
                       row_chunk, nt, t_valid, t_pad):
    """One (batch, time-tile) grid step.

    xp_ref   : (2*halo, Cp) bf16  rows [t*tt-16, t*tt)       (use last `halo`)
    xc_ref   : (tt, Cp)     bf16  rows [t*tt, (t+1)*tt)
    xn_ref   : (2*halo, Cp) bf16  rows [(t+1)*tt, (t+1)*tt+16) (use first `halo`)
    pw1_w_ref: (Cp, 2*Cp)   bf16  pointwise_conv1 weight (transposed)
    pw1_b_ref: (1, 2*Cp)    f32   pointwise_conv1 bias
    dwp_ref  : (K+2, Cp)    f32   rows 0..K-1 BN-folded depthwise weights,
                                  row K folded bias, row K+1 pw2 bias
    pw2_w_ref: (Cp, Cp)     bf16  pointwise_conv2 weight (transposed)
    o_ref    : (tt, Cp)     out dtype
    y_ref    : (tt+2*halo, Cp) f32 VMEM scratch -- staged GLU output window
    """
    t = pl.program_id(1)
    cp = xc_ref.shape[-1]

    def glu(xin):                                   # (n, Cp) bf16 -> f32
        h = jnp.dot(xin, pw1_w_ref[...],
                    preferred_element_type=jnp.float32) + pw1_b_ref[...]
        return h[:, :cp] * jax.nn.sigmoid(h[:, cp:])

    # ---- left halo rows: global [t*tt - halo, t*tt); zero for the first tile
    left = glu(xp_ref[halo:, :])
    y_ref[0:halo, :] = jnp.where(t > 0, left, 0.0)

    # ---- right halo rows: global [(t+1)*tt, (t+1)*tt + halo); zero past T
    right = glu(xn_ref[:halo, :])
    rrow = (t + 1) * tt + jax.lax.broadcasted_iota(jnp.int32, (halo, 1), 0)
    y_ref[halo + tt:, :] = jnp.where(rrow < t_valid, right, 0.0)

    # ---- center rows: pw1 + GLU in row chunks (bounded live ranges)
    n_chunks = tt // row_chunk

    def glu_chunk(c, carry):
        base = pl.multiple_of(c * row_chunk, row_chunk)
        y_ref[pl.ds(halo + base, row_chunk), :] = glu(
            xc_ref[pl.ds(base, row_chunk), :])
        return carry

    jax.lax.fori_loop(0, n_chunks, glu_chunk, 0)

    # ---- last tile only: rows >= T are the depthwise conv's zero padding
    rem = t_pad - t_valid                      # static Python int
    if rem > 0:
        @pl.when(t == nt - 1)
        def _():
            y_ref[halo + tt - rem:halo + tt, :] = jnp.zeros((rem, cp),
                                                            jnp.float32)

    # ---- depthwise conv (BN folded) + ReLU + pointwise_conv2, in row chunks
    off = halo - (kernel_size - 1) // 2        # = 1 for K=15, halo=8
    w_all = dwp_ref[...]                       # (K+2, Cp) f32, a few vregs

    def dw_chunk(c, carry):
        base = pl.multiple_of(c * row_chunk, row_chunk)
        acc = jnp.zeros((row_chunk, cp), jnp.float32)
        for k in range(kernel_size):           # static unroll: 15 taps
            acc = acc + (y_ref[pl.ds(base + off + k, row_chunk), :]
                         * w_all[k:k + 1, :])
        acc = acc + w_all[kernel_size:kernel_size + 1, :]     # folded bias
        z = jnp.maximum(acc, 0.0).astype(pw2_w_ref.dtype)
        out = jnp.dot(z, pw2_w_ref[...], preferred_element_type=jnp.float32)
        out = out + w_all[kernel_size + 1:kernel_size + 2, :]  # pw2 bias
        o_ref[pl.ds(base, row_chunk), :] = out.astype(o_ref.dtype)
        return carry

    jax.lax.fori_loop(0, n_chunks, dw_chunk, 0)


def fold_and_pad_params(params, channels, kernel_size, eps):
    """Fold BN into the depthwise conv, pad channels to a multiple of 128."""
    C, K = channels, kernel_size
    Cp = max(128, _round_up(C, 128))

    scale = params["bn_gamma"] * jax.lax.rsqrt(params["bn_var"] + eps)   # (C,)

    pw1_w = jnp.zeros((Cp, 2 * Cp), jnp.float32)
    pw1_w = pw1_w.at[:C, :C].set(params["pw1_w"][:, :C])          # GLU "a" half
    pw1_w = pw1_w.at[:C, Cp:Cp + C].set(params["pw1_w"][:, C:])   # GLU gate half
    pw1_b = jnp.zeros((1, 2 * Cp), jnp.float32)
    pw1_b = pw1_b.at[0, :C].set(params["pw1_b"][:C])
    pw1_b = pw1_b.at[0, Cp:Cp + C].set(params["pw1_b"][C:])

    dw_pack = jnp.zeros((K + 2, Cp), jnp.float32)
    dw_pack = dw_pack.at[:K, :C].set(params["dw_w"] * scale[None, :])
    dw_pack = dw_pack.at[K, :C].set(
        (params["dw_b"] - params["bn_mean"]) * scale + params["bn_beta"])
    dw_pack = dw_pack.at[K + 1, :C].set(params["pw2_b"])

    pw2_w = jnp.zeros((Cp, Cp), jnp.float32)
    pw2_w = pw2_w.at[:C, :C].set(params["pw2_w"])

    return {
        "pw1_w": pw1_w.astype(jnp.bfloat16),
        "pw1_b": pw1_b,
        "dw_pack": dw_pack,
        "pw2_w": pw2_w.astype(jnp.bfloat16),
        "cp": Cp,
    }


def convolution_module_forward(x, params, *, kernel_size=15, eps=1e-5,
                               time_tile=512, row_chunk=64,
                               out_dtype=jnp.bfloat16):
    """x: (B, T, C) float32. Returns (y, new_cache) like the PyTorch module."""
    B, T, C = x.shape
    K = kernel_size
    HALO = 8                    # compute halo (>= (K-1)//2)
    HFETCH = 16                 # halo DMA block (bf16-friendly sublane count)
    assert (K - 1) % 2 == 0 and (K - 1) // 2 <= HALO

    kp = fold_and_pad_params(params, C, K, eps)
    Cp = kp["cp"]

    # --- time tiling (multiples of 16 keep bf16 blocks natively tiled) ------
    tt = max(16, _round_up(min(time_tile, T), 16))
    # megacore occupancy: keep at least 2 grid steps when possible (v7x: 2 TCs)
    if B * _cdiv(T, tt) < 2 and T > 16:
        tt = max(16, _round_up(_cdiv(T, 2), 16))
    T_pad = _round_up(T, tt)
    NT = T_pad // tt
    W = tt + 2 * HALO

    # row chunk: multiple of 16 that divides tt
    rc = max(16, min(row_chunk, tt) - (min(row_chunk, tt) % 16))
    while tt % rc:
        rc -= 16

    # --- single contiguous padded/bf16 input copy (no window gather) --------
    x_pad = jnp.zeros((B, T_pad, Cp), jnp.bfloat16)
    x_pad = x_pad.at[:, :T, :C].set(x.astype(jnp.bfloat16))

    nb = tt // HFETCH            # halo-fetch blocks per center tile
    nhb = T_pad // HFETCH        # halo-fetch blocks along time

    kernel = functools.partial(
        conv_module_kernel, kernel_size=K, tt=tt, halo=HALO, row_chunk=rc,
        nt=NT, t_valid=T, t_pad=T_pad)

    # --- chip-aware VMEM budget (double-buffered blocks + scratch) ----------
    in_bytes = (tt * Cp * 2 + 2 * HFETCH * Cp * 2 + Cp * 2 * Cp * 2
                + 2 * Cp * 4 + (K + 2) * Cp * 4 + Cp * Cp * 2)
    out_bytes = tt * Cp * jnp.dtype(out_dtype).itemsize
    scratch_bytes = W * Cp * 4
    vmem_est = 2 * (in_bytes + out_bytes) + scratch_bytes + 6 * rc * Cp * 4
    vmem_limit = int(min(_vmem_cap_bytes(),
                         max(32 * 1024 * 1024, int(1.5 * vmem_est))))

    y_pad = pl.pallas_call(
        kernel,
        out_shape=jax.ShapeDtypeStruct((B, T_pad, Cp), out_dtype),
        grid=(B, NT),
        in_specs=[
            # left-halo fetch block: rows [t*tt - 16, t*tt)  (clamped at t=0)
            # TODO(synk): if xprof shows exposed input DMA on v5e, add
            #             pipeline_mode=pl.Buffered(3) to the center spec.
            pl.BlockSpec((None, HFETCH, Cp),
                         lambda b, t: (b, jnp.maximum(t * nb - 1, 0), 0)),
            # center tile: rows [t*tt, (t+1)*tt)
            pl.BlockSpec((None, tt, Cp), lambda b, t: (b, t, 0)),
            # right-halo fetch block: rows [(t+1)*tt, (t+1)*tt + 16) (clamped)
            pl.BlockSpec((None, HFETCH, Cp),
                         lambda b, t: (b, jnp.minimum((t + 1) * nb, nhb - 1),
                                       0)),
            pl.BlockSpec((Cp, 2 * Cp), lambda b, t: (0, 0)),   # pw1_w
            pl.BlockSpec((1, 2 * Cp), lambda b, t: (0, 0)),    # pw1_b
            pl.BlockSpec((K + 2, Cp), lambda b, t: (0, 0)),    # dw pack
            pl.BlockSpec((Cp, Cp), lambda b, t: (0, 0)),       # pw2_w
        ],
        out_specs=pl.BlockSpec((None, tt, Cp), lambda b, t: (b, t, 0)),
        scratch_shapes=[pltpu.VMEM((W, Cp), jnp.float32)],
        compiler_params=pltpu.CompilerParams(
            dimension_semantics=("parallel", "parallel"),
            vmem_limit_bytes=vmem_limit),
    )(x_pad, x_pad, x_pad, kp["pw1_w"], kp["pw1_b"], kp["dw_pack"],
      kp["pw2_w"])

    # Skip the post-kernel slice copy when no padding was introduced.
    y = y_pad if (T_pad == T and Cp == C) else y_pad[:, :T, :C]
    # Non-causal (lorder == 0) -> empty new_cache, same as the PyTorch module.
    new_cache = jnp.zeros((0, 0, 0), dtype=x.dtype)
    return y, new_cache


def reference_forward(x, params, *, kernel_size=15, eps=1e-5):
    """Pure-JAX reference with the same bf16-MXU / f32-elementwise policy."""
    B, T, C = x.shape
    h = jnp.dot(x.astype(jnp.bfloat16), params["pw1_w"].astype(jnp.bfloat16),
                preferred_element_type=jnp.float32) + params["pw1_b"]
    y = h[..., :C] * jax.nn.sigmoid(h[..., C:])
    pad = (kernel_size - 1) // 2
    yp = jnp.pad(y, ((0, 0), (pad, pad), (0, 0)))
    acc = jnp.zeros_like(y)
    for k in range(kernel_size):
        acc = acc + yp[:, k:k + T, :] * params["dw_w"][k]
    acc = acc + params["dw_b"]
    inv_std = jax.lax.rsqrt(params["bn_var"] + eps)
    z = (acc - params["bn_mean"]) * inv_std * params["bn_gamma"] + params["bn_beta"]
    z = jnp.maximum(z, 0.0)
    return jnp.dot(z.astype(jnp.bfloat16), params["pw2_w"].astype(jnp.bfloat16),
                   preferred_element_type=jnp.float32) + params["pw2_b"]


def make_params(key, channels, kernel_size):
    """Deterministic synthetic parameters matching the module's shapes."""
    C, K = channels, kernel_size
    pw_max = C ** (-0.5)
    dw_max = K ** (-0.5)
    ks = jax.random.split(key, 10)
    u = lambda k, shape, lim: jax.random.uniform(k, shape, jnp.float32, -lim, lim)
    return {
        # PyTorch pointwise_conv1.weight (2C, C, 1) stored transposed (C, 2C)
        "pw1_w": u(ks[0], (C, 2 * C), pw_max),
        "pw1_b": u(ks[1], (2 * C,), pw_max),
        # PyTorch depthwise_conv.weight (C, 1, K) stored as (K, C)
        "dw_w": u(ks[2], (K, C), dw_max),
        "dw_b": u(ks[3], (C,), dw_max),
        # BatchNorm1d (eval): affine params + running stats
        "bn_gamma": 1.0 + 0.1 * jax.random.normal(ks[4], (C,), jnp.float32),
        "bn_beta": 0.1 * jax.random.normal(ks[5], (C,), jnp.float32),
        "bn_mean": 0.1 * jax.random.normal(ks[6], (C,), jnp.float32),
        "bn_var": jax.random.uniform(ks[7], (C,), jnp.float32, 0.5, 1.5),
        # PyTorch pointwise_conv2.weight (C, C, 1) stored transposed (C, C)
        "pw2_w": u(ks[8], (C, C), pw_max),
        "pw2_b": u(ks[9], (C,), pw_max),
    }


if __name__ == "__main__":
    B, T, C, K = 2, 80, 32, 15          # small demo shapes (#batch, time, ch)
    key = jax.random.PRNGKey(0)
    kx, kparam = jax.random.split(key)
    x = jax.random.normal(kx, (B, T, C), jnp.float32)
    params = make_params(kparam, C, K)

    y_ref = reference_forward(x, params, kernel_size=K)

    # Strict check: f32 output, small tiles so the grid is (2, 3) with
    # multiple row chunks, clamped halos and last-tile T-padding all exercised.
    y32, cache = convolution_module_forward(x, params, kernel_size=K,
                                            time_tile=32, row_chunk=16,
                                            out_dtype=jnp.float32)
    y32 = jax.block_until_ready(y32)
    assert y32.shape == (B, T, C)
    assert cache.shape == (0, 0, 0)
    err32 = float(jnp.max(jnp.abs(y32 - y_ref)))
    assert jnp.allclose(y32, y_ref, atol=2e-3, rtol=2e-3), err32

    # Default production path: bf16 output, large time tile (single tile here).
    ybf, _ = convolution_module_forward(x, params, kernel_size=K)
    ybf = jax.block_until_ready(ybf)
    errbf = float(jnp.max(jnp.abs(ybf.astype(jnp.float32) - y_ref)))
    assert jnp.allclose(ybf.astype(jnp.float32), y_ref,
                        atol=8e-3, rtol=8e-3), errbf

    print("KERNEL_OK")
</pallas_src>

<mosaic_0001>
module attributes {stable_mosaic.version = 11 : i64} {
  func.func @conv_module_kernel(%arg0: i32, %arg1: i32, %arg2: memref<1x16x128xbf16, #tpu.memory_space<vmem>>, %arg3: memref<1x32x128xbf16, #tpu.memory_space<vmem>>, %arg4: memref<1x16x128xbf16, #tpu.memory_space<vmem>>, %arg5: memref<128x256xbf16, #tpu.memory_space<vmem>>, %arg6: memref<1x256xf32, #tpu.memory_space<vmem>>, %arg7: memref<17x128xf32, #tpu.memory_space<vmem>>, %arg8: memref<128x128xbf16, #tpu.memory_space<vmem>>, %arg9: memref<1x32x128xf32, #tpu.memory_space<vmem>>, %arg10: memref<48x128xf32, #tpu.memory_space<vmem>>) attributes {dimension_semantics = [#tpu.dimension_semantics<parallel>, #tpu.dimension_semantics<parallel>], iteration_bounds = array<i64: 2, 3>, scalar_prefetch = 0 : i64, scratch_operands = 1 : i64, tpu.core_type = #tpu.core_type<tc>, window_params = [{transform_indices = @transform_0, window_bounds = array<i64: 1, 16, 128>}, {transform_indices = @transform_1, window_bounds = array<i64: 1, 32, 128>}, {transform_indices = @transform_2, window_bounds = array<i64: 1, 16, 128>}, {pipeline_mode = #tpu.pipeline_mode<synchronous>, transform_indices = @transform_3, window_bounds = array<i64: 128, 256>}, {pipeline_mode = #tpu.pipeline_mode<synchronous>, transform_indices = @transform_4, window_bounds = array<i64: 1, 256>}, {pipeline_mode = #tpu.pipeline_mode<synchronous>, transform_indices = @transform_5, window_bounds = array<i64: 17, 128>}, {pipeline_mode = #tpu.pipeline_mode<synchronous>, transform_indices = @transform_6, window_bounds = array<i64: 128, 128>}, {transform_indices = @transform_7, window_bounds = array<i64: 1, 32, 128>}]} {
    %c0 = arith.constant 0 : index
    %c8 = arith.constant 8 : index
    %c0_0 = arith.constant 0 : index
    %0 = vector.load %arg2[%c0, %c8, %c0_0] : memref<1x16x128xbf16, #tpu.memory_space<vmem>>, vector<1x8x128xbf16>
    %1 = vector.shape_cast %0 : vector<1x8x128xbf16> to vector<8x128xbf16>
    %c0_1 = arith.constant 0 : index
    %c0_2 = arith.constant 0 : index
    %2 = vector.load %arg5[%c0_1, %c0_2] : memref<128x256xbf16, #tpu.memory_space<vmem>>, vector<128x256xbf16>
    %cst = arith.constant dense<0.000000e+00> : vector<8x256xf32>
    %3 = tpu.matmul %1, %2, %cst {dimension_numbers = #tpu.dot_dimension_numbers<[1], [0], [0], [1], [0, 0, 1, 1], [], []>} : vector<8x128xbf16>, vector<128x256xbf16>, vector<8x256xf32> -> vector<8x256xf32>
    %c0_3 = arith.constant 0 : index
    %c0_4 = arith.constant 0 : index
    %4 = vector.load %arg6[%c0_3, %c0_4] : memref<1x256xf32, #tpu.memory_space<vmem>>, vector<1x256xf32>
    %5 = vector.broadcast %4 : vector<1x256xf32> to vector<8x256xf32>
    %6 = arith.addf %3, %5 : vector<8x256xf32>
    %7 = vector.extract_strided_slice %6 {offsets = [0, 0], sizes = [8, 128], strides = [1, 1]} : vector<8x256xf32> to vector<8x128xf32>
    %8 = vector.extract_strided_slice %6 {offsets = [0, 128], sizes = [8, 128], strides = [1, 1]} : vector<8x256xf32> to vector<8x128xf32>
    %9 = arith.negf %8 : vector<8x128xf32>
    %10 = math.exp %9 : vector<8x128xf32>
    %cst_5 = arith.constant 1.000000e+00 : f32
    %11 = vector.broadcast %cst_5 : f32 to vector<8x128xf32>
    %12 = arith.addf %11, %10 : vector<8x128xf32>
    %13 = arith.divf %11, %12 : vector<8x128xf32>
    %14 = arith.mulf %7, %13 : vector<8x128xf32>
    %c0_i32 = arith.constant 0 : i32
    %15 = arith.cmpi sgt, %arg1, %c0_i32 : i32
    %cst_6 = arith.constant 0.000000e+00 : f32
    %16 = vector.broadcast %cst_6 : f32 to vector<8x128xf32>
    %17 = arith.select %15, %14, %16 : vector<8x128xf32>
    %c0_7 = arith.constant 0 : index
    %c0_8 = arith.constant 0 : index
    %18 = vector.load %arg10[%c0_7, %c0_8] : memref<48x128xf32, #tpu.memory_space<vmem>>, vector<8x128xf32>
    tpu.vector_store %arg10[%c0_7, %c0_8], %17 {strides = array<i32>} : memref<48x128xf32, #tpu.memory_space<vmem>>, vector<8x128xf32>,
    %c0_9 = arith.constant 0 : index
    %c0_10 = arith.constant 0 : index
    %c0_11 = arith.constant 0 : index
    %19 = vector.load %arg4[%c0_9, %c0_10, %c0_11] : memref<1x16x128xbf16, #tpu.memory_space<vmem>>, vector<1x8x128xbf16>
    %20 = vector.shape_cast %19 : vector<1x8x128xbf16> to vector<8x128xbf16>
    %c0_12 = arith.constant 0 : index
    %c0_13 = arith.constant 0 : index
    %21 = vector.load %arg5[%c0_12, %c0_13] : memref<128x256xbf16, #tpu.memory_space<vmem>>, vector<128x256xbf16>
    %cst_14 = arith.constant dense<0.000000e+00> : vector<8x256xf32>
    %22 = tpu.matmul %20, %21, %cst_14 {dimension_numbers = #tpu.dot_dimension_numbers<[1], [0], [0], [1], [0, 0, 1, 1], [], []>} : vector<8x128xbf16>, vector<128x256xbf16>, vector<8x256xf32> -> vector<8x256xf32>
    %c0_15 = arith.constant 0 : index
    %c0_16 = arith.constant 0 : index
    %23 = vector.load %arg6[%c0_15, %c0_16] : memref<1x256xf32, #tpu.memory_space<vmem>>, vector<1x256xf32>
    %24 = vector.broadcast %23 : vector<1x256xf32> to vector<8x256xf32>
    %25 = arith.addf %22, %24 : vector<8x256xf32>
    %26 = vector.extract_strided_slice %25 {offsets = [0, 0], sizes = [8, 128], strides = [1, 1]} : vector<8x256xf32> to vector<8x128xf32>
    %27 = vector.extract_strided_slice %25 {offsets = [0, 128], sizes = [8, 128], strides = [1, 1]} : vector<8x256xf32> to vector<8x128xf32>
    %28 = arith.negf %27 : vector<8x128xf32>
    %29 = math.exp %28 : vector<8x128xf32>
    %cst_17 = arith.constant 1.000000e+00 : f32
    %30 = vector.broadcast %cst_17 : f32 to vector<8x128xf32>
    %31 = arith.addf %30, %29 : vector<8x128xf32>
    %32 = arith.divf %30, %31 : vector<8x128xf32>
    %33 = arith.mulf %26, %32 : vector<8x128xf32>
    %c1_i32 = arith.constant 1 : i32
    %34 = arith.addi %arg1, %c1_i32 : i32
    %c32_i32 = arith.constant 32 : i32
    %35 = arith.muli %34, %c32_i32 : i32
    %36 = tpu.iota {dimensions = array<i32: 0>} : vector<8x1xi32>
    %37 = vector.broadcast %35 : i32 to vector<8x1xi32>
    %38 = arith.addi %37, %36 : vector<8x1xi32>
    %c80_i32 = arith.constant 80 : i32
    %39 = vector.broadcast %c80_i32 : i32 to vector<8x1xi32>
    %40 = arith.cmpi slt, %38, %39 : vector<8x1xi32>
    %cst_18 = arith.constant 0.000000e+00 : f32
    %41 = vector.shape_cast %40 : vector<8x1xi1> to vector<8x1xi1>
    %42 = vector.broadcast %41 : vector<8x1xi1> to vector<8x128xi1>
    %43 = vector.broadcast %cst_18 : f32 to vector<8x128xf32>
    %44 = arith.select %42, %33, %43 : vector<8x128xi1>, vector<8x128xf32>
    %c40 = arith.constant 40 : index
    %c0_19 = arith.constant 0 : index
    %45 = vector.load %arg10[%c40, %c0_19] : memref<48x128xf32, #tpu.memory_space<vmem>>, vector<8x128xf32>
    tpu.vector_store %arg10[%c40, %c0_19], %44 {strides = array<i32>} : memref<48x128xf32, #tpu.memory_space<vmem>>, vector<8x128xf32>,
    %c0_i32_20 = arith.constant 0 : i32
    %c2_i32 = arith.constant 2 : i32
    %46 = arith.addi %c0_i32_20, %c2_i32 : i32
    %c1_i32_21 = arith.constant 1 : i32
    scf.for %arg11 = %c0_i32_20 to %46 step %c1_i32_21  : i32 {
      %c16_i32 = arith.constant 16 : i32
      %52 = arith.muli %arg11, %c16_i32 : i32
      %53 = tpu.assume_multiple %52, 16 : i32
      %c0_31 = arith.constant 0 : index
      %54 = arith.index_cast %53 : i32 to index
      %c0_32 = arith.constant 0 : index
      %55 = vector.load %arg3[%c0_31, %54, %c0_32] : memref<1x32x128xbf16, #tpu.memory_space<vmem>>, vector<1x16x128xbf16>
      %56 = vector.shape_cast %55 : vector<1x16x128xbf16> to vector<16x128xbf16>
      %c0_33 = arith.constant 0 : index
      %c0_34 = arith.constant 0 : index
      %57 = vector.load %arg5[%c0_33, %c0_34] : memref<128x256xbf16, #tpu.memory_space<vmem>>, vector<128x256xbf16>
      %cst_35 = arith.constant dense<0.000000e+00> : vector<16x256xf32>
      %58 = tpu.matmul %56, %57, %cst_35 {dimension_numbers = #tpu.dot_dimension_numbers<[1], [0], [0], [1], [0, 0, 1, 1], [], []>} : vector<16x128xbf16>, vector<128x256xbf16>, vector<16x256xf32> -> vector<16x256xf32>
      %c0_36 = arith.constant 0 : index
      %c0_37 = arith.constant 0 : index
      %59 = vector.load %arg6[%c0_36, %c0_37] : memref<1x256xf32, #tpu.memory_space<vmem>>, vector<1x256xf32>
      %60 = vector.broadcast %59 : vector<1x256xf32> to vector<16x256xf32>
      %61 = arith.addf %58, %60 : vector<16x256xf32>
      %62 = vector.extract_strided_slice %61 {offsets = [0, 0], sizes = [16, 128], strides = [1, 1]} : vector<16x256xf32> to vector<16x128xf32>
      %63 = vector.extract_strided_slice %61 {offsets = [0, 128], sizes = [16, 128], strides = [1, 1]} : vector<16x256xf32> to vector<16x128xf32>
      %64 = arith.negf %63 : vector<16x128xf32>
      %65 = math.exp %64 : vector<16x128xf32>
      %cst_38 = arith.constant 1.000000e+00 : f32
      %66 = vector.broadcast %cst_38 : f32 to vector<16x128xf32>
      %67 = arith.addf %66, %65 : vector<16x128xf32>
      %68 = arith.divf %66, %67 : vector<16x128xf32>
      %69 = arith.mulf %62, %68 : vector<16x128xf32>
      %c8_i32 = arith.constant 8 : i32
      %70 = arith.addi %c8_i32, %53 : i32
      %71 = arith.index_cast %70 : i32 to index
      %c0_39 = arith.constant 0 : index
      %72 = vector.load %arg10[%71, %c0_39] : memref<48x128xf32, #tpu.memory_space<vmem>>, vector<16x128xf32>
      tpu.vector_store %arg10[%71, %c0_39], %69 {strides = array<i32>} : memref<48x128xf32, #tpu.memory_space<vmem>>, vector<16x128xf32>,
    }
    %c2_i32_22 = arith.constant 2 : i32
    %c2_i32_23 = arith.constant 2 : i32
    %47 = arith.cmpi eq, %arg1, %c2_i32_23 : i32
    %48 = arith.extui %47 : i1 to i32
    %c0_i32_24 = arith.constant 0 : i32
    %49 = arith.cmpi ne, %48, %c0_i32_24 : i32
    scf.if %49 {
      %cst_31 = arith.constant 0.000000e+00 : f32
      %52 = vector.broadcast %cst_31 : f32 to vector<16x128xf32>
      %c24 = arith.constant 24 : index
      %c0_32 = arith.constant 0 : index
      %53 = vector.load %arg10[%c24, %c0_32] : memref<48x128xf32, #tpu.memory_space<vmem>>, vector<16x128xf32>
      tpu.vector_store %arg10[%c24, %c0_32], %52 {strides = array<i32>} : memref<48x128xf32, #tpu.memory_space<vmem>>, vector<16x128xf32>,
    } else {
    }
    %c0_25 = arith.constant 0 : index
    %c0_26 = arith.constant 0 : index
    %50 = vector.load %arg7[%c0_25, %c0_26] : memref<17x128xf32, #tpu.memory_space<vmem>>, vector<17x128xf32>
    %c0_i32_27 = arith.constant 0 : i32
    %c2_i32_28 = arith.constant 2 : i32
    %51 = arith.addi %c0_i32_27, %c2_i32_28 : i32
    %c1_i32_29 = arith.constant 1 : i32
    scf.for %arg11 = %c0_i32_27 to %51 step %c1_i32_29  : i32 {
      %c16_i32 = arith.constant 16 : i32
      %52 = arith.muli %arg11, %c16_i32 : i32
      %53 = tpu.assume_multiple %52, 16 : i32
      %cst_31 = arith.constant 0.000000e+00 : f32
      %54 = vector.broadcast %cst_31 : f32 to vector<16x128xf32>
      %c1_i32_32 = arith.constant 1 : i32
      %55 = arith.addi %53, %c1_i32_32 : i32
      %c0_i32_33 = arith.constant 0 : i32
      %56 = arith.addi %55, %c0_i32_33 : i32
      %57 = arith.index_cast %56 : i32 to index
      %c0_34 = arith.constant 0 : index
      %58 = vector.load %arg10[%57, %c0_34] : memref<48x128xf32, #tpu.memory_space<vmem>>, vector<16x128xf32>
      %59 = vector.extract_strided_slice %50 {offsets = [0, 0], sizes = [1, 128], strides = [1, 1]} : vector<17x128xf32> to vector<1x128xf32>
      %60 = vector.broadcast %59 : vector<1x128xf32> to vector<16x128xf32>
      %61 = arith.mulf %58, %60 : vector<16x128xf32>
      %62 = arith.addf %54, %61 : vector<16x128xf32>
      %c1_i32_35 = arith.constant 1 : i32
      %63 = arith.addi %53, %c1_i32_35 : i32
      %c1_i32_36 = arith.constant 1 : i32
      %64 = arith.addi %63, %c1_i32_36 : i32
      %65 = arith.index_cast %64 : i32 to index
      %c0_37 = arith.constant 0 : index
      %66 = vector.load %arg10[%65, %c0_37] : memref<48x128xf32, #tpu.memory_space<vmem>>, vector<16x128xf32>
      %67 = vector.extract_strided_slice %50 {offsets = [1, 0], sizes = [1, 128], strides = [1, 1]} : vector<17x128xf32> to vector<1x128xf32>
      %68 = vector.broadcast %67 : vector<1x128xf32> to vector<16x128xf32>
      %69 = arith.mulf %66, %68 : vector<16x128xf32>
      %70 = arith.addf %62, %69 : vector<16x128xf32>
      %c1_i32_38 = arith.constant 1 : i32
      %71 = arith.addi %53, %c1_i32_38 : i32
      %c2_i32_39 = arith.constant 2 : i32
      %72 = arith.addi %71, %c2_i32_39 : i32
      %73 = arith.index_cast %72 : i32 to index
      %c0_40 = arith.constant 0 : index
      %74 = vector.load %arg10[%73, %c0_40] : memref<48x128xf32, #tpu.memory_space<vmem>>, vector<16x128xf32>
      %75 = vector.extract_strided_slice %50 {offsets = [2, 0], sizes = [1, 128], strides = [1, 1]} : vector<17x128xf32> to vector<1x128xf32>
      %76 = vector.broadcast %75 : vector<1x128xf32> to vector<16x128xf32>
      %77 = arith.mulf %74, %76 : vector<16x128xf32>
      %78 = arith.addf %70, %77 : vector<16x128xf32>
      %c1_i32_41 = arith.constant 1 : i32
      %79 = arith.addi %53, %c1_i32_41 : i32
      %c3_i32 = arith.constant 3 : i32
      %80 = arith.addi %79, %c3_i32 : i32
      %81 = arith.index_cast %80 : i32 to index
      %c0_42 = arith.constant 0 : index
      %82 = vector.load %arg10[%81, %c0_42] : memref<48x128xf32, #tpu.memory_space<vmem>>, vector<16x128xf32>
      %83 = vector.extract_strided_slice %50 {offsets = [3, 0], sizes = [1, 128], strides = [1, 1]} : vector<17x128xf32> to vector<1x128xf32>
      %84 = vector.broadcast %83 : vector<1x128xf32> to vector<16x128xf32>
      %85 = arith.mulf %82, %84 : vector<16x128xf32>
      %86 = arith.addf %78, %85 : vector<16x128xf32>
      %c1_i32_43 = arith.constant 1 : i32
      %87 = arith.addi %53, %c1_i32_43 : i32
      %c4_i32 = arith.constant 4 : i32
      %88 = arith.addi %87, %c4_i32 : i32
      %89 = arith.index_cast %88 : i32 to index
      %c0_44 = arith.constant 0 : index
      %90 = vector.load %arg10[%89, %c0_44] : memref<48x128xf32, #tpu.memory_space<vmem>>, vector<16x128xf32>
      %91 = vector.extract_strided_slice %50 {offsets = [4, 0], sizes = [1, 128], strides = [1, 1]} : vector<17x128xf32> to vector<1x128xf32>
      %92 = vector.broadcast %91 : vector<1x128xf32> to vector<16x128xf32>
      %93 = arith.mulf %90, %92 : vector<16x128xf32>
      %94 = arith.addf %86, %93 : vector<16x128xf32>
      %c1_i32_45 = arith.constant 1 : i32
      %95 = arith.addi %53, %c1_i32_45 : i32
      %c5_i32 = arith.constant 5 : i32
      %96 = arith.addi %95, %c5_i32 : i32
      %97 = arith.index_cast %96 : i32 to index
      %c0_46 = arith.constant 0 : index
      %98 = vector.load %arg10[%97, %c0_46] : memref<48x128xf32, #tpu.memory_space<vmem>>, vector<16x128xf32>
      %99 = vector.extract_strided_slice %50 {offsets = [5, 0], sizes = [1, 128], strides = [1, 1]} : vector<17x128xf32> to vector<1x128xf32>
      %100 = vector.broadcast %99 : vector<1x128xf32> to vector<16x128xf32>
      %101 = arith.mulf %98, %100 : vector<16x128xf32>
      %102 = arith.addf %94, %101 : vector<16x128xf32>
      %c1_i32_47 = arith.constant 1 : i32
      %103 = arith.addi %53, %c1_i32_47 : i32
      %c6_i32 = arith.constant 6 : i32
      %104 = arith.addi %103, %c6_i32 : i32
      %105 = arith.index_cast %104 : i32 to index
      %c0_48 = arith.constant 0 : index
      %106 = vector.load %arg10[%105, %c0_48] : memref<48x128xf32, #tpu.memory_space<vmem>>, vector<16x128xf32>
      %107 = vector.extract_strided_slice %50 {offsets = [6, 0], sizes = [1, 128], strides = [1, 1]} : vector<17x128xf32> to vector<1x128xf32>
      %108 = vector.broadcast %107 : vector<1x128xf32> to vector<16x128xf32>
      %109 = arith.mulf %106, %108 : vector<16x128xf32>
      %110 = arith.addf %102, %109 : vector<16x128xf32>
      %c1_i32_49 = arith.constant 1 : i32
      %111 = arith.addi %53, %c1_i32_49 : i32
      %c7_i32 = arith.constant 7 : i32
      %112 = arith.addi %111, %c7_i32 : i32
      %113 = arith.index_cast %112 : i32 to index
      %c0_50 = arith.constant 0 : index
      %114 = vector.load %arg10[%113, %c0_50] : memref<48x128xf32, #tpu.memory_space<vmem>>, vector<16x128xf32>
      %115 = vector.extract_strided_slice %50 {offsets = [7, 0], sizes = [1, 128], strides = [1, 1]} : vector<17x128xf32> to vector<1x128xf32>
      %116 = vector.broadcast %115 : vector<1x128xf32> to vector<16x128xf32>
      %117 = arith.mulf %114, %116 : vector<16x128xf32>
      %118 = arith.addf %110, %117 : vector<16x128xf32>
      %c1_i32_51 = arith.constant 1 : i32
      %119 = arith.addi %53, %c1_i32_51 : i32
      %c8_i32 = arith.constant 8 : i32
      %120 = arith.addi %119, %c8_i32 : i32
      %121 = arith.index_cast %120 : i32 to index
      %c0_52 = arith.constant 0 : index
      %122 = vector.load %arg10[%121, %c0_52] : memref<48x128xf32, #tpu.memory_space<vmem>>, vector<16x128xf32>
      %123 = vector.extract_strided_slice %50 {offsets = [8, 0], sizes = [1, 128], strides = [1, 1]} : vector<17x128xf32> to vector<1x128xf32>
      %124 = vector.broadcast %123 : vector<1x128xf32> to vector<16x128xf32>
      %125 = arith.mulf %122, %124 : vector<16x128xf32>
      %126 = arith.addf %118, %125 : vector<16x128xf32>
      %c1_i32_53 = arith.constant 1 : i32
      %127 = arith.addi %53, %c1_i32_53 : i32
      %c9_i32 = arith.constant 9 : i32
      %128 = arith.addi %127, %c9_i32 : i32
      %129 = arith.index_cast %128 : i32 to index
      %c0_54 = arith.constant 0 : index
      %130 = vector.load %arg10[%129, %c0_54] : memref<48x128xf32, #tpu.memory_space<vmem>>, vector<16x128xf32>
      %131 = vector.extract_strided_slice %50 {offsets = [9, 0], sizes = [1, 128], strides = [1, 1]} : vector<17x128xf32> to vector<1x128xf32>
      %132 = vector.broadcast %131 : vector<1x128xf32> to vector<16x128xf32>
      %133 = arith.mulf %130, %132 : vector<16x128xf32>
      %134 = arith.addf %126, %133 : vector<16x128xf32>
      %c1_i32_55 = arith.constant 1 : i32
      %135 = arith.addi %53, %c1_i32_55 : i32
      %c10_i32 = arith.constant 10 : i32
      %136 = arith.addi %135, %c10_i32 : i32
      %137 = arith.index_cast %136 : i32 to index
      %c0_56 = arith.constant 0 : index
      %138 = vector.load %arg10[%137, %c0_56] : memref<48x128xf32, #tpu.memory_space<vmem>>, vector<16x128xf32>
      %139 = vector.extract_strided_slice %50 {offsets = [10, 0], sizes = [1, 128], strides = [1, 1]} : vector<17x128xf32> to vector<1x128xf32>
      %140 = vector.broadcast %139 : vector<1x128xf32> to vector<16x128xf32>
      %141 = arith.mulf %138, %140 : vector<16x128xf32>
      %142 = arith.addf %134, %141 : vector<16x128xf32>
      %c1_i32_57 = arith.constant 1 : i32
      %143 = arith.addi %53, %c1_i32_57 : i32
      %c11_i32 = arith.constant 11 : i32
      %144 = arith.addi %143, %c11_i32 : i32
      %145 = arith.index_cast %144 : i32 to index
      %c0_58 = arith.constant 0 : index
      %146 = vector.load %arg10[%145, %c0_58] : memref<48x128xf32, #tpu.memory_space<vmem>>, vector<16x128xf32>
      %147 = vector.extract_strided_slice %50 {offsets = [11, 0], sizes = [1, 128], strides = [1, 1]} : vector<17x128xf32> to vector<1x128xf32>
      %148 = vector.broadcast %147 : vector<1x128xf32> to vector<16x128xf32>
      %149 = arith.mulf %146, %148 : vector<16x128xf32>
      %150 = arith.addf %142, %149 : vector<16x128xf32>
      %c1_i32_59 = arith.constant 1 : i32
      %151 = arith.addi %53, %c1_i32_59 : i32
      %c12_i32 = arith.constant 12 : i32
      %152 = arith.addi %151, %c12_i32 : i32
      %153 = arith.index_cast %152 : i32 to index
      %c0_60 = arith.constant 0 : index
      %154 = vector.load %arg10[%153, %c0_60] : memref<48x128xf32, #tpu.memory_space<vmem>>, vector<16x128xf32>
      %155 = vector.extract_strided_slice %50 {offsets = [12, 0], sizes = [1, 128], strides = [1, 1]} : vector<17x128xf32> to vector<1x128xf32>
      %156 = vector.broadcast %155 : vector<1x128xf32> to vector<16x128xf32>
      %157 = arith.mulf %154, %156 : vector<16x128xf32>
      %158 = arith.addf %150, %157 : vector<16x128xf32>
      %c1_i32_61 = arith.constant 1 : i32
      %159 = arith.addi %53, %c1_i32_61 : i32
      %c13_i32 = arith.constant 13 : i32
      %160 = arith.addi %159, %c13_i32 : i32
      %161 = arith.index_cast %160 : i32 to index
      %c0_62 = arith.constant 0 : index
      %162 = vector.load %arg10[%161, %c0_62] : memref<48x128xf32, #tpu.memory_space<vmem>>, vector<16x128xf32>
      %163 = vector.extract_strided_slice %50 {offsets = [13, 0], sizes = [1, 128], strides = [1, 1]} : vector<17x128xf32> to vector<1x128xf32>
      %164 = vector.broadcast %163 : vector<1x128xf32> to vector<16x128xf32>
      %165 = arith.mulf %162, %164 : vector<16x128xf32>
      %166 = arith.addf %158, %165 : vector<16x128xf32>
      %c1_i32_63 = arith.constant 1 : i32
      %167 = arith.addi %53, %c1_i32_63 : i32
      %c14_i32 = arith.constant 14 : i32
      %168 = arith.addi %167, %c14_i32 : i32
      %169 = arith.index_cast %168 : i32 to index
      %c0_64 = arith.constant 0 : index
      %170 = vector.load %arg10[%169, %c0_64] : memref<48x128xf32, #tpu.memory_space<vmem>>, vector<16x128xf32>
      %171 = vector.extract_strided_slice %50 {offsets = [14, 0], sizes = [1, 128], strides = [1, 1]} : vector<17x128xf32> to vector<1x128xf32>
      %172 = vector.broadcast %171 : vector<1x128xf32> to vector<16x128xf32>
      %173 = arith.mulf %170, %172 : vector<16x128xf32>
      %174 = arith.addf %166, %173 : vector<16x128xf32>
      %175 = vector.extract_strided_slice %50 {offsets = [15, 0], sizes = [1, 128], strides = [1, 1]} : vector<17x128xf32> to vector<1x128xf32>
      %176 = vector.broadcast %175 : vector<1x128xf32> to vector<16x128xf32>
      %177 = arith.addf %174, %176 : vector<16x128xf32>
      %cst_65 = arith.constant 0.000000e+00 : f32
      %178 = vector.broadcast %cst_65 : f32 to vector<16x128xf32>
      %179 = arith.maximumf %177, %178 : vector<16x128xf32>
      %180 = arith.truncf %179 : vector<16x128xf32> to vector<16x128xbf16>
      %c0_66 = arith.constant 0 : index
      %c0_67 = arith.constant 0 : index
      %181 = vector.load %arg8[%c0_66, %c0_67] : memref<128x128xbf16, #tpu.memory_space<vmem>>, vector<128x128xbf16>
      %cst_68 = arith.constant dense<0.000000e+00> : vector<16x128xf32>
      %182 = tpu.matmul %180, %181, %cst_68 {dimension_numbers = #tpu.dot_dimension_numbers<[1], [0], [0], [1], [0, 0, 1, 1], [], []>} : vector<16x128xbf16>, vector<128x128xbf16>, vector<16x128xf32> -> vector<16x128xf32>
      %183 = vector.extract_strided_slice %50 {offsets = [16, 0], sizes = [1, 128], strides = [1, 1]} : vector<17x128xf32> to vector<1x128xf32>
      %184 = vector.broadcast %183 : vector<1x128xf32> to vector<16x128xf32>
      %185 = arith.addf %182, %184 : vector<16x128xf32>
      %c0_69 = arith.constant 0 : index
      %186 = arith.index_cast %53 : i32 to index
      %c0_70 = arith.constant 0 : index
      %187 = vector.load %arg9[%c0_69, %186, %c0_70] : memref<1x32x128xf32, #tpu.memory_space<vmem>>, vector<1x16x128xf32>
      %188 = vector.shape_cast %187 : vector<1x16x128xf32> to vector<16x128xf32>
      %189 = vector.shape_cast %185 : vector<16x128xf32> to vector<1x16x128xf32>
      tpu.vector_store %arg9[%c0_69, %186, %c0_70], %189 {strides = array<i32>} : memref<1x32x128xf32, #tpu.memory_space<vmem>>, vector<1x16x128xf32>,
    }
    %c2_i32_30 = arith.constant 2 : i32
    return
  }
  func.func @transform_0(%arg0: i32, %arg1: i32) -> (i32, i32, i32) {
    %c2_i32 = arith.constant 2 : i32
    %0 = arith.muli %arg1, %c2_i32 : i32
    %c1_i32 = arith.constant 1 : i32
    %1 = arith.subi %0, %c1_i32 : i32
    %c0_i32 = arith.constant 0 : i32
    %2 = arith.maxsi %1, %c0_i32 : i32
    %c0_i32_0 = arith.constant 0 : i32
    %c0_i32_1 = arith.constant 0 : i32
    return %arg0, %2, %c0_i32_0 : i32, i32, i32
  }
  func.func @transform_1(%arg0: i32, %arg1: i32) -> (i32, i32, i32) {
    %c0_i32 = arith.constant 0 : i32
    %c0_i32_0 = arith.constant 0 : i32
    return %arg0, %arg1, %c0_i32 : i32, i32, i32
  }
  func.func @transform_2(%arg0: i32, %arg1: i32) -> (i32, i32, i32) {
    %c1_i32 = arith.constant 1 : i32
    %0 = arith.addi %arg1, %c1_i32 : i32
    %c2_i32 = arith.constant 2 : i32
    %1 = arith.muli %0, %c2_i32 : i32
    %c5_i32 = arith.constant 5 : i32
    %2 = arith.minsi %1, %c5_i32 : i32
    %c0_i32 = arith.constant 0 : i32
    %c0_i32_0 = arith.constant 0 : i32
    return %arg0, %2, %c0_i32 : i32, i32, i32
  }
  func.func @transform_3(%arg0: i32, %arg1: i32) -> (i32, i32) {
    %c0_i32 = arith.constant 0 : i32
    %c0_i32_0 = arith.constant 0 : i32
    %c0_i32_1 = arith.constant 0 : i32
    return %c0_i32, %c0_i32_0 : i32, i32
  }
  func.func @transform_4(%arg0: i32, %arg1: i32) -> (i32, i32) {
    %c0_i32 = arith.constant 0 : i32
    %c0_i32_0 = arith.constant 0 : i32
    %c0_i32_1 = arith.constant 0 : i32
    return %c0_i32, %c0_i32_0 : i32, i32
  }
  func.func @transform_5(%arg0: i32, %arg1: i32) -> (i32, i32) {
    %c0_i32 = arith.constant 0 : i32
    %c0_i32_0 = arith.constant 0 : i32
    %c0_i32_1 = arith.constant 0 : i32
    return %c0_i32, %c0_i32_0 : i32, i32
  }
  func.func @transform_6(%arg0: i32, %arg1: i32) -> (i32, i32) {
    %c0_i32 = arith.constant 0 : i32
    %c0_i32_0 = arith.constant 0 : i32
    %c0_i32_1 = arith.constant 0 : i32
    return %c0_i32, %c0_i32_0 : i32, i32
  }
  func.func @transform_7(%arg0: i32, %arg1: i32) -> (i32, i32, i32) {
    %c0_i32 = arith.constant 0 : i32
    %c0_i32_0 = arith.constant 0 : i32
    return %arg0, %arg1, %c0_i32 : i32, i32, i32
  }
}

</mosaic_0001>

<bundles_post_ra>
// kernel: tpu_custom_call.1
= control target key start
LH: loop header
LB: loop body
LE: loop exit
PB: predicated region body
PF: predicated region fallthrough
CT: control target
= control target key end

     0   :  { %s3159_s0 = inlined_call_operand.hbm [shape: bf16[2,96,128], index: 0, kind: input, shape index: {}]   ;;  %s3160_s1 = inlined_call_operand.hbm [shape: bf16[2,96,128], index: 1, kind: input, shape index: {}]   ;;  %s3161_s2 = inlined_call_operand.hbm [shape: bf16[2,96,128], index: 2, kind: input, shape index: {}]   ;;  %s3162_s3 = inlined_call_operand.hbm [shape: bf16[128,256], index: 3, kind: input, shape index: {}]   ;;  %s3163_s4 = inlined_call_operand.vmem [shape: f32[1,256], index: 4, kind: input, shape index: {}]   ;;  %s3164_s5 = inlined_call_operand.hbm [shape: f32[17,128], index: 5, kind: input, shape index: {}]   ;;  %s3165_s6 = inlined_call_operand.hbm [shape: bf16[128,128], index: 6, kind: input, shape index: {}]   ;;  %s3166_s7 = inlined_call_operand.hbm [shape: f32[2,96,128], index: 7, kind: output, shape index: {}]  }
   0x1   :  { %3199 = sst [smem:[#allocation34_spill]] %s3159_s0 }
   0x2   :  { %3200 = sst [smem:[#allocation35_spill]] %s3160_s1 }
   0x3   :  { %3201 = sst [smem:[#allocation36_spill]] %s3161_s2 }
   0x4   :  { %3202 = sst [smem:[#allocation37_spill]] %s3162_s3 }
   0x5   :  { %3203 = sst [smem:[#allocation38_spill]] %s3163_s4 }
   0x6   :  { %3204 = sst [smem:[#allocation39_spill]] %s3164_s5 }
   0x7   :  { %3205 = sst [smem:[#allocation40_spill]] %s3165_s6 }
   0x8   :  { %3206 = sst [smem:[#allocation41_spill]] %s3166_s7 }
   0x9   :  { %12 = vsyncpa [#allocation4], 0 }
   0xa   :  { %14 = vsyncpa [#allocation4 + $0x1], 0 }
   0xb   :  { %15 = vsyncpa [#allocation7], 0 }
   0xc   :  { %17 = vsyncpa [#allocation7 + $0x1], 0 }
   0xd   :  { %18 = vsyncpa [#allocation10], 0 }
   0xe   :  { %19 = vsyncpa [#allocation13], 0 }
   0xf   :  { %20 = vsyncpa [#allocation5], 0 }
  0x10   :  { %22 = vsyncpa [#allocation5 + $0x1], 0  ;;  %s2436_s24 = smov 0   ;;  %s2438_s25 = smov 0  }
  0x11   :  { %s2440_s26 = smov 0   ;;  %s2442_s27 = smov 0  }
  0x12   :  { %s2444_s28 = smov 0   ;;  %s2446_s29 = smov 0  }
  0x13   :  { %s2448_s30 = smov 0   ;;  %s2450_s8 = smov 0  }
  0x14   :  { %s2452_s9 = smov 0   ;;  %s2454_s10 = smov 0  }
  0x15   :  { %s2456_s11 = smov 0   ;;  %s2458_s12 = smov 0  }
  0x16   :  { %s2460_s13 = smov 0   ;;  %s2462_s14 = smov 0  }
  0x17 LB: > { %3207 = sst [smem:[#allocation21_spill]] %s2316_s24  ;;  %s2507_s15 = sadd.s32 4294967295, %s2368_s14   ;;  %s2368_s14 = sphi %s2462_s14, %s28_s14   ;;  %s2364_s13 = sphi %s2460_s13, %s3300_s13   ;;  %s2360_s12 = sphi %s2458_s12, %s3299_s12   ;;  %s2356_s11 = sphi %s2456_s11, %s3298_s11   ;;  %s2352_s10 = sphi %s2454_s10, %s3297_s10   ;;  %s2348_s9 = sphi %s2452_s9, %s3296_s9   ;;  %s2344_s8 = sphi %s2450_s8, %s3295_s8   ;;  %s2340_s30 = sphi %s2448_s30, %s3294_s30   ;;  %s2336_s29 = sphi %s2446_s29, %s3293_s29   ;;  %s2332_s28 = sphi %s2444_s28, %s3292_s28   ;;  %s2328_s27 = sphi %s2442_s27, %s3288_s27   ;;  %s2324_s26 = sphi %s2440_s26, %s3291_s26   ;;  %s2320_s25 = sphi %s2438_s25, %s3287_s25   ;;  %s2316_s24 = sphi %s2436_s24, %s3286_s24  }
  0x18   : > { %3208 = sst [smem:[#allocation22_spill]] %s2320_s25  ;;  %p1571_p0 = scmp.ge.s32.totalorder %s2368_s14, 1 }
  0x19   : > { %3209 = sst [smem:[#allocation23_spill]] %s2324_s26  ;;  %p3169_p1 = scmp.eq.s32.totalorder %s2507_s15, 0 }
  0x1a   : > { %3210 = sst [smem:[#allocation24_spill]] %s2328_s27  ;;  %p257_p3 = scmp.lt.s32.totalorder %s2368_s14, 7 }
  0x1b   : > { %3211 = sst [smem:[#allocation25_spill]] %s2332_s28  ;;  %s2378_s17 = smov [#allocation9]  }
  0x1c   : > { %3212 = sst [smem:[#allocation26_spill]] %s2352_s10  ;;  %p2513_p4 = pnand %p1571_p0, %p257_p3 }
  0x1d   : > { %3213 = sst [smem:[#allocation27_spill]] %s2356_s11  ;;  %s269_s18 = sshll.u32 %s2378_s17, 4  ;;  %s270_s18 = int_to_ptr.vmem [resolvable:$true] %s269_s18 }
  0x1e   : > { %s3214_s16 = scalar_select %p2513_p4, 1, 0 }
  0x1f   : > { %p1777_p5 = pneg %p2513_p4  ;;  %s3217_s3 = sld [smem:[#allocation37_spill]] }
  0x20   : > { %3215 = sst [smem:[#allocation28_spill]] %s3214_s16 }
  0x21   : > { %p2521_p6 = pnand %p1777_p5, %p3169_p1 }
  0x23   : > { %s3216_s19 = scalar_select %p2521_p6, 1, 0 }
  0x24   : > { %p2533_p8 = pneg %p2521_p6 }
  0x25   : > { %s2024_s22 = scalar_lea.hbm %s3217_s3, 2048 }
  0x26   : > { %p2025_p7 = scmp.ne.s32.totalorder %s3217_s3, %s2024_s22  ;;  %p2031_p11 = scmp.lt.u32.totalorder %s2024_s22, %s3217_s3 }
  0x28   : > { %p2027_p9 = pnand %p2533_p8, %p2025_p7 }
  0x2a   : > { %p2028_p10 = pneg %p2027_p9 }
  0x2c   : > { %p2033_p12 = pnand %p2031_p11, %p2028_p10 }
  0x2e   : > { %2036 = shalt.err (!%p2033_p12)
}
  0x2f   : > { %s2037_s20 = scalar_lea.vmem %s270_s18, 2048  ;;  %p2045_p5 = scmp.lt.s32.totalorder %s270_s18, %s270_s18 }
  0x30   : > { %p2038_p13 = scmp.ne.s32.totalorder %s270_s18, %s2037_s20  ;;  %p2046_p2 = scmp.lt.s32.totalorder %s2037_s20, %s2037_s20 }
  0x32   : > { %p2040_p0 = pnand %p2038_p13, %p2533_p8  ;;  %p2047_p1 = por %p2046_p2, %p2045_p5 }
  0x34   : > { %p2041_p3 = pneg %p2040_p0 }
  0x36   : > { %p2048_p4 = pnand %p2047_p1, %p2041_p3 }
  0x38   : > { %2051 = shalt.err (!%p2048_p4)
}
  0x39   : > { %s3173_s7 = smov 128   ;;  %s3174_s10 = smov 8  }
  0x3a   : > { %1780 = dma.hbm_to_vmem [thread:$0]  (!%p2521_p6), %s3217_s3, 2048, %s270_s18, [#allocation10], %s3173_s7, %s3173_s7, %s3174_s10  }
  0x3b   : > { %s1564_s22 = sadd.s32 4294967294, %s2368_s14   ;;  %s37_s23 = sadd.s32 1, %s2360_s12 }
  0x3c   : > { %p2554_p1 = scmp.ge.s32.totalorder %s37_s23, 3  ;;  %p3185_p2 = scmp.eq.s32.totalorder %s2368_s14, 0 }
  0x3d   : > { %p92_p4 = scmp.ne.s32.totalorder %s2336_s29, %s2332_s28  ;;  %p98_p7 = scmp.ne.s32.totalorder %s2332_s28, %s2328_s27 }
  0x3e   : > { %s3219_s20 = scalar_select %p2554_p1, 1, 0 }
  0x3f   : > { %s3302_s23 = smov (%p2554_p1, %s37_s23), 0  ;;  %p250_p9 = scmp.eq.s32.totalorder %s1564_s22, 5 }
  0x40   : > { %3220 = sst [smem:[#allocation29_spill]] %s3302_s23  ;;  %p2573_p10 = por %p92_p4, %p3185_p2 }
  0x41   : > { %p3222_p11 = scmp.eq.s32.totalorder %s2507_s15, 0  ;;  %p3225_p13 = scmp.eq.s32.totalorder %s2507_s15, 5 }
  0x42   : > { %p2589_p3 = por %p250_p9, %p98_p7  ;;  %p3184_p5 = scmp.lt.s32.totalorder %s2368_s14, 6 }
  0x43   : > { %p2579_p12 = por %p98_p7, %p3222_p11  ;;  %p2585_p0 = por %p3225_p13, %p92_p4 }
  0x44   : > { %s3228_s18 = scalar_select %p2589_p3, 1, 0 }
  0x45   : > { %s3223_s21 = scalar_select %p2579_p12, 1, 0 }
  0x46   : > { %s3226_s16 = scalar_select %p2585_p0, 1, 0 }
  0x47   : > { %3224 = sst [smem:[#allocation30_spill]] %s3223_s21  ;;  %s2595_s22 = smul.u32 12, %s2364_s13 }
  0x48   : > { %3227 = sst [smem:[#allocation31_spill]] %s3226_s16  ;;  %s339_s4 = sand.u32 1, %s2368_s14  }
  0x49   : > { %3229 = sst [smem:[#allocation32_spill]] %s3228_s18  ;;  %s341_s7 = sand.u32 1, %s2336_s29  }
  0x4a   : > { %s1581_s10 = sshll.u32 %s341_s7, 4  ;;  %s1582_s3 = sshll.u32 %s2360_s12, 2 }
  0x4b   : > { %s349_s27 = sadd.s32 %s2595_s22, %s1582_s3  ;;  %s343_s28 = scalar_lea.vmem [#allocation6], %s1581_s10 }
  0x4c   : > { %s352_s21 = sshll.u32 %s343_s28, 4  ;;  %s1583_s2 = sshll.u32 %s349_s27, 6  ;;  %s2601_s21 = int_to_ptr.vmem [resolvable:$true] %s352_s21 }
  0x4d   : > { %s3230_s1 = sld [smem:[#allocation35_spill]]  ;;  %p2612_p4 = pnand %p3184_p5, %p2573_p10 }
  0x4e   : > { %s2381_s3 = smov [#allocation11]   ;;  %s2618_s28 = scalar_lea.sflag [#allocation7], %s339_s4 }
  0x4f   : > { %s2616_s27 = sshll.u32 %s2381_s3, 4  ;;  %p2054_p9 = pneg %p2612_p4  ;;  %s286_s27 = int_to_ptr.vmem [resolvable:$true] %s2616_s27 }
  0x53   : > { %s2606_s25 = scalar_lea.hbm %s3230_s1, %s1583_s2  ;;  %s2057_s10 = scalar_lea.hbm %s3230_s1, 1536 }
  0x54   : > { %s2052_s24 = scalar_lea.hbm %s2606_s25, 256  ;;  %p2058_p10 = scmp.lt.u32.totalorder %s2606_s25, %s3230_s1 }
  0x55   : > { %p2053_p7 = scmp.ne.s32.totalorder %s2606_s25, %s2052_s24  ;;  %p2059_p5 = scmp.lt.u32.totalorder %s2057_s10, %s2052_s24 }
  0x56   : > { %p2061_p3 = scmp.lt.u32.totalorder %s2052_s24, %s2606_s25 }
  0x57   : > { %p2055_p11 = pnand %p2054_p9, %p2053_p7  ;;  %p2060_p2 = por %p2059_p5, %p2058_p10 }
  0x59   : > { %p2056_p13 = pneg %p2055_p11  ;;  %p2062_p0 = por %p2061_p3, %p2060_p2 }
  0x5b   : > { %p2063_p12 = pnand %p2062_p0, %p2056_p13 }
  0x5d   : > { %2066 = shalt.err (!%p2063_p12)
}
  0x5e   : > { %s2067_s4 = scalar_lea.vmem %s2601_s21, 256  ;;  %s2382_s3 = smov [#allocation6]  }
  0x5f   : > { %p2068_p7 = scmp.ne.s32.totalorder %s2601_s21, %s2067_s4  ;;  %s2072_s2 = sshll.u32 %s2382_s3, 4  ;;  %s2073_s2 = int_to_ptr.vmem [resolvable:$false] %s2072_s2 }
  0x60   : > { %s2074_s18 = scalar_lea.vmem %s2073_s2, 512  ;;  %p2075_p6 = scmp.lt.s32.totalorder %s2601_s21, %s2073_s2 }
  0x61   : > { %p2070_p11 = pnand %p2068_p7, %p2054_p9  ;;  %p2076_p5 = scmp.lt.s32.totalorder %s2074_s18, %s2067_s4 }
  0x63   : > { %p2071_p1 = pneg %p2070_p11  ;;  %p2077_p10 = por %p2076_p5, %p2075_p6 }
  0x65   : > { %p2078_p2 = pnand %p2077_p10, %p2071_p1 }
  0x67   : > { %2081 = shalt.err (!%p2078_p2)
}
  0x68   : > { %s3192_s24 = smov 64   ;;  %s3194_s16 = smov 4  }
  0x69   : > { %1793 = dma.hbm_to_vmem [thread:$0]  (!%p2612_p4), %s2606_s25, 256, %s2601_s21, %s2618_s28, %s3192_s24, %s3192_s24, %s3194_s16  }
  0x6a   : > { %s2385_s10 = smov [#allocation12]   ;;  %s3232_s5 = sld [smem:[#allocation39_spill]] }
  0x6b   : > { %s298_s11 = sshll.u32 %s2385_s10, 4  ;;  %s299_s11 = int_to_ptr.vmem [resolvable:$true] %s298_s11 }
  0x70   : > { %s2082_s2 = scalar_lea.hbm %s3232_s5, 384 }
  0x71   : > { %p2083_p6 = scmp.ne.s32.totalorder %s3232_s5, %s2082_s2  ;;  %p2089_p0 = scmp.lt.u32.totalorder %s2082_s2, %s3232_s5 }
  0x73   : > { %p2085_p1 = pnand %p2083_p6, %p2533_p8 }
  0x75   : > { %p2086_p12 = pneg %p2085_p1 }
  0x77   : > { %p2091_p3 = pnand %p2089_p0, %p2086_p12 }
  0x79   : > { %2094 = shalt.err (!%p2091_p3)
}
  0x7a   : > { %s2095_s25 = scalar_lea.vmem %s286_s27, 384  ;;  %p2103_p7 = scmp.lt.s32.totalorder %s286_s27, %s286_s27 }
  0x7b   : > { %p2096_p4 = scmp.ne.s32.totalorder %s286_s27, %s2095_s25  ;;  %p2104_p11 = scmp.lt.s32.totalorder %s2095_s25, %s2095_s25 }
  0x7d   : > { %p2098_p9 = pnand %p2096_p4, %p2533_p8  ;;  %p2105_p5 = por %p2104_p11, %p2103_p7 }
  0x7f   : > { %p2099_p13 = pneg %p2098_p9 }
  0x81   : > { %p2106_p10 = pnand %p2105_p5, %p2099_p13 }
  0x83   : > { %2109 = shalt.err (!%p2106_p10)
}
  0x84   : > { %p3233_p2 = scmp.ne.s32.totalorder %s3216_s19, 0  ;;  %s3234_s1 = smov 8  }
  0x85   : > { %s3235_s21 = smov 128   ;;  %s3236_s6 = sld [smem:[#allocation40_spill]] }
  0x86   : > { %1783 = dma.hbm_to_vmem [thread:$0]  (!%p3233_p2), %s3232_s5, 384, %s286_s27, [#allocation10], %s3235_s21, %s3235_s21, %s3234_s1  }
  0x8b   : > { %s2110_s2 = scalar_lea.hbm %s3236_s6, 1024 }
  0x8c   : > { %p2111_p6 = scmp.ne.s32.totalorder %s3236_s6, %s2110_s2  ;;  %p2117_p0 = scmp.lt.u32.totalorder %s2110_s2, %s3236_s6 }
  0x8e   : > { %p2113_p1 = pnand %p2111_p6, %p2533_p8 }
  0x90   : > { %p2114_p12 = pneg %p2113_p1 }
  0x92   : > { %p2119_p3 = pnand %p2117_p0, %p2114_p12 }
  0x94   : > { %2122 = shalt.err (!%p2119_p3)
}
  0x95   : > { %s2123_s26 = scalar_lea.vmem %s299_s11, 1024  ;;  %p2131_p7 = scmp.lt.s32.totalorder %s299_s11, %s299_s11 }
  0x96   : > { %p2124_p4 = scmp.ne.s32.totalorder %s299_s11, %s2123_s26  ;;  %p2132_p11 = scmp.lt.s32.totalorder %s2123_s26, %s2123_s26 }
  0x98   : > { %p2126_p9 = pnand %p2124_p4, %p2533_p8  ;;  %p2133_p5 = por %p2132_p11, %p2131_p7 }
  0x9a   : > { %p2127_p13 = pneg %p2126_p9 }
  0x9c   : > { %p2134_p10 = pnand %p2133_p5, %p2127_p13 }
  0x9e   : > { %2137 = shalt.err (!%p2134_p10)
}
  0x9f   : > { %s3237_s27 = smov 64   ;;  %s1565_s19 = sshll.u32 %s2360_s12, 1 }
  0xa0   : > { %1786 = dma.hbm_to_vmem [thread:$0]  (!%p3233_p2), %s3236_s6, 1024, %s299_s11, [#allocation13], %s3237_s27, %s3237_s27, %s3194_s16  }
  0xa1   : > { %s3238_s17 = sadd.s32 1, %s2364_s13  ;;  %p3239_p8 = scmp.ne.s32.totalorder %s3219_s20, 0 }
  0xa2   : > { %s1566_s21 = sadd.s32 4294967295, %s1565_s19  ;;  %s1567_s10 = sshll.u32 %s3302_s23, 1 }
  0xa3   : > { %s3304_s17 = smov (!%p3239_p8, %s3238_s17), %s2364_s13  ;;  %p46_p1 = scmp.gt.s32.totalorder %s1566_s21, 0 }
  0xa4   : > { %p42_p6 = scmp.ge.s32.totalorder %s3304_s17, 2  ;;  %s1568_s4 = sadd.s32 4294967295, %s1567_s10 }
  0xa5   : > { %s57_s3 = sadd.s32 1, %s2348_s9  ;;  %s3308_s21 = smov (!%p46_p1, %s1566_s21), 0 }
  0xa6   : > { %s3306_s17 = smov (%p42_p6, %s3304_s17), 0  ;;  %p50_p2 = scmp.gt.s32.totalorder %s1568_s4, 0 }
  0xa7   : > { %3240 = sst [smem:[#allocation33_spill]] %s3306_s17  ;;  %s2704_s11 = ssub.s32 %s2364_s13, %s3306_s17 }
  0xa8   : > { %p64_p12 = scmp.ne.s32.totalorder %s2348_s9, %s2344_s8  ;;  %p70_p0 = scmp.ne.s32.totalorder %s2344_s8, %s2340_s30 }
  0xa9   : > { %s3310_s4 = smov (!%p50_p2, %s1568_s4), 0  ;;  %p3241_p3 = scmp.eq.s32.totalorder %s2368_s14, 0 }
  0xaa   : > { %p3243_p9 = scmp.eq.s32.totalorder %s2507_s15, 0  ;;  %s53_s18 = ssub.s32 %s3308_s21, %s3310_s4 }
  0xab   : > { %p2712_p4 = por %p3241_p3, %p64_p12  ;;  %s3245_s7 = ssub.s32 %s2360_s12, %s3302_s23 }
  0xac   : > { %p2718_p13 = por %p3243_p9, %p70_p0  ;;  %s82_s25 = sor.u32 %s3245_s7, %s2704_s11 }
  0xad   : > { %s54_s26 = sor.u32 %s53_s18, %s2704_s11  ;;  %p83_p7 = scmp.eq.s32.totalorder %s82_s25, 0 }
  0xae   : > { %p55_p11 = scmp.eq.s32.totalorder %s54_s26, 0  ;;  %s2727_s30 = sadd.s32 2, %s1565_s19 }
  0xaf   : > { %s3246_s24 = sadd.s32 1, %s2336_s29  ;;  %s2738_s5 = sadd.s32 2, %s1567_s10 }
  0xb0   : > { %s2732_s1 = scalar_select %p83_p7, %s2336_s29, %s3246_s24  }
  0xb1   : > { %s2735_s16 = scalar_select %p55_p11, %s2348_s9, %s57_s3  }
  0xb2   : > { %s312_s4 = sand.u32 1, %s2348_s9   ;;  %s1579_s18 = sshll.u32 %s3308_s21, 1 }
  0xb3   : > { %s1576_s7 = sshll.u32 %s312_s4, 3  ;;  %s326_s25 = sadd.s32 %s2595_s22, %s1579_s18 }
  0xb4   : > { %s316_s26 = scalar_lea.vmem [#allocation3], %s1576_s7  ;;  %s1580_s17 = sshll.u32 %s326_s25, 6 }
  0xb5   : > { %s329_s6 = sshll.u32 %s316_s26, 4  ;;  %s3247_s0 = sld [smem:[#allocation34_spill]]  ;;  %s2743_s6 = int_to_ptr.vmem [resolvable:$true] %s329_s6 }
  0xb6   : > { %p3248_p8 = scmp.lt.s32.totalorder %s2368_s14, 6  ;;  %s2758_s21 = scalar_lea.sflag [#allocation4], %s312_s4 }
  0xb8   : > { %p2754_p6 = pnand %p3248_p8, %p2712_p4 }
  0xba   : > { %p2140_p2 = pneg %p2754_p6 }
  0xbb   : > { %s2748_s24 = scalar_lea.hbm %s3247_s0, %s1580_s17  ;;  %s2143_s20 = scalar_lea.hbm %s3247_s0, 1536 }
  0xbc   : > { %s2138_s3 = scalar_lea.hbm %s2748_s24, 128  ;;  %p2144_p3 = scmp.lt.u32.totalorder %s2748_s24, %s3247_s0 }
  0xbd   : > { %p2139_p1 = scmp.ne.s32.totalorder %s2748_s24, %s2138_s3  ;;  %p2145_p4 = scmp.lt.u32.totalorder %s2143_s20, %s2138_s3 }
  0xbe   : > { %p2147_p7 = scmp.lt.u32.totalorder %s2138_s3, %s2748_s24 }
  0xbf   : > { %p2141_p12 = pnand %p2140_p2, %p2139_p1  ;;  %p2146_p9 = por %p2145_p4, %p2144_p3 }
  0xc1   : > { %p2142_p0 = pneg %p2141_p12  ;;  %p2148_p11 = por %p2147_p7, %p2146_p9 }
  0xc3   : > { %p2149_p8 = pnand %p2148_p11, %p2142_p0 }
  0xc5   : > { %2152 = shalt.err (!%p2149_p8)
}
  0xc6   : > { %s2153_s4 = scalar_lea.vmem %s2743_s6, 128  ;;  %s2386_s25 = smov [#allocation3]  }
  0xc7   : > { %p2154_p1 = scmp.ne.s32.totalorder %s2743_s6, %s2153_s4  ;;  %s2158_s26 = sshll.u32 %s2386_s25, 4  ;;  %s2159_s26 = int_to_ptr.vmem [resolvable:$false] %s2158_s26 }
  0xc8   : > { %s2160_s19 = scalar_lea.vmem %s2159_s26, 256  ;;  %p2161_p5 = scmp.lt.s32.totalorder %s2743_s6, %s2159_s26 }
  0xc9   : > { %p2156_p12 = pnand %p2154_p1, %p2140_p2  ;;  %p2162_p3 = scmp.lt.s32.totalorder %s2160_s19, %s2153_s4 }
  0xcb   : > { %p2157_p10 = pneg %p2156_p12  ;;  %p2163_p4 = por %p2162_p3, %p2161_p5 }
  0xcd   : > { %p2164_p9 = pnand %p2163_p4, %p2157_p10 }
  0xcf   : > { %2167 = shalt.err (!%p2164_p9)
}
  0xd0   : > { %s3250_s3 = smov 4   ;;  %s3251_s23 = sld [smem:[#allocation23_spill]] }
  0xd1   : > { %s3252_s17 = sld [smem:[#allocation22_spill]]  ;;  %s3253_s20 = sld [smem:[#allocation21_spill]] }
  0xd2   : > { %1790 = dma.hbm_to_vmem [thread:$0]  (!%p2754_p6), %s2748_s24, 128, %s2743_s6, %s2758_s21, %s3237_s27, %s3237_s27, %s3250_s3  }
  0xd3   : > { %p3254_p5 = scmp.lt.s32.totalorder %s2727_s30, 5  ;;  %p3255_p10 = scmp.lt.s32.totalorder %s2738_s5, 5 }
  0xd4   : > { %p3256_p7 = scmp.eq.s32.totalorder %s2368_s14, 0  ;;  %p3257_p1 = scmp.eq.s32.totalorder %s2507_s15, 0 }
  0xd5   : > { %s3312_s30 = smov (!%p3254_p5, %s2727_s30), 5  ;;  %s3314_s5 = smov (!%p3255_p10, %s2738_s5), 5 }
  0xd6   : > { %s121_s10 = sadd.s32 1, %s3251_s23  ;;  %s117_s7 = ssub.s32 %s3312_s30, %s3314_s5 }
  0xd7   : > { %p128_p2 = scmp.ne.s32.totalorder %s3251_s23, %s3252_s17  ;;  %p134_p0 = scmp.ne.s32.totalorder %s3252_s17, %s3253_s20 }
  0xd8   : > { %s364_s18 = sand.u32 1, %s3251_s23   ;;  %s118_s4 = sor.u32 %s117_s7, %s2704_s11 }
  0xd9   : > { %p130_p11 = por %p128_p2, %p3256_p7  ;;  %p119_p8 = scmp.eq.s32.totalorder %s118_s4, 0 }
  0xda   : > { %p2806_p12 = por %p134_p0, %p3257_p1  ;;  %s1584_s6 = sshll.u32 %s364_s18, 3 }
  0xdb   : > { %s1586_s24 = sshll.u32 %s3312_s30, 1  ;;  %s3316_s23 = smov (!%p119_p8, %s3251_s23), %s121_s10 }
  0xdc   : > { %s3258_s25 = scalar_select %p2806_p12, 1, 0 }
  0xdd   : > { %s376_s21 = sadd.s32 %s2595_s22, %s1586_s24  ;;  %s366_s19 = scalar_lea.vmem [#allocation8], %s1584_s6 }
  0xde   : > { %s1587_s26 = sshll.u32 %s376_s21, 6  ;;  %s379_s17 = sshll.u32 %s366_s19, 4  ;;  %s2819_s17 = int_to_ptr.vmem [resolvable:$true] %s379_s17 }
  0xdf   : > { %s3259_s0 = sld [smem:[#allocation36_spill]]  ;;  %p3260_p6 = scmp.lt.s32.totalorder %s2368_s14, 6 }
  0xe1   : > { %p2823_p3 = pnand %p3260_p6, %p130_p11 }
  0xe3   : > { %p2170_p9 = pneg %p2823_p3 }
  0xe5   : > { %s2817_s11 = scalar_lea.hbm %s3259_s0, %s1587_s26  ;;  %s2173_s18 = scalar_lea.hbm %s3259_s0, 1536 }
  0xe6   : > { %s2168_s22 = scalar_lea.hbm %s2817_s11, 128  ;;  %p2174_p2 = scmp.lt.u32.totalorder %s2817_s11, %s3259_s0 }
  0xe7   : > { %p2169_p4 = scmp.ne.s32.totalorder %s2817_s11, %s2168_s22  ;;  %p2175_p0 = scmp.lt.u32.totalorder %s2173_s18, %s2168_s22 }
  0xe8   : > { %p2177_p11 = scmp.lt.u32.totalorder %s2168_s22, %s2817_s11 }
  0xe9   : > { %p2171_p5 = pnand %p2170_p9, %p2169_p4  ;;  %p2176_p7 = por %p2175_p0, %p2174_p2 }
  0xeb   : > { %p2172_p10 = pneg %p2171_p5  ;;  %p2178_p8 = por %p2177_p11, %p2176_p7 }
  0xed   : > { %p2179_p1 = pnand %p2178_p8, %p2172_p10 }
  0xef   : > { %2182 = shalt.err (!%p2179_p1)
}
  0xf0   : > { %s2183_s24 = scalar_lea.vmem %s2819_s17, 128  ;;  %s2387_s21 = smov [#allocation8]  }
  0xf1   : > { %p2184_p6 = scmp.ne.s32.totalorder %s2819_s17, %s2183_s24  ;;  %s2188_s26 = sshll.u32 %s2387_s21, 4  ;;  %s2189_s26 = int_to_ptr.vmem [resolvable:$false] %s2188_s26 }
  0xf2   : > { %s2190_s19 = scalar_lea.vmem %s2189_s26, 256  ;;  %p2191_p12 = scmp.lt.s32.totalorder %s2819_s17, %s2189_s26 }
  0xf3   : > { %p2186_p4 = pnand %p2184_p6, %p2170_p9  ;;  %p2192_p2 = scmp.lt.s32.totalorder %s2190_s19, %s2183_s24 }
  0xf5   : > { %p2187_p5 = pneg %p2186_p4  ;;  %p2193_p0 = por %p2192_p2, %p2191_p12 }
  0xf7   : > { %p2194_p7 = pnand %p2193_p0, %p2187_p5 }
  0xf9   : > { %2197 = shalt.err (!%p2194_p7)
}
  0xfa   : > { %1796 = dma.hbm_to_vmem [thread:$0]  (!%p2823_p3), %s2817_s11, 128, %s2819_s17, %s2618_s28, %s3237_s27, %s3237_s27, %s3250_s3  }
  0xfb   : > { %s3262_s20 = sld [smem:[#allocation28_spill]] }
 0x101   : > { %p3263_p9 = scmp.ne.s32.totalorder %s3262_s20, 0 }
 0x102   : > { %s393_s5 = sand.u32 (!%p3263_p9), 1, %s2344_s8  }
 0x103   : > { %391 = sbr.rel (%p3263_p9) target bundleno = 1134 (0x46e), region = 48  ;;  %s2859_s22 = sshll.u32 (!%p3263_p9), %s393_s5, 3 }
 0x104   : > { %s394_s10 = scalar_lea.sflag (!%p3263_p9), [#allocation4], %s393_s5  ;;  %s397_s7 = scalar_lea.vmem (!%p3263_p9), [#allocation3], %s2859_s22 }
 0x10a   : > { %2291 = dma.done.wait (%p2718_p13), %s394_s10, 128  }
 0x10b   : > { %2293 = vsyncadd (%p2718_p13), %s394_s10, 4294967168  ;;  %s3264_s30 = sld [smem:[#allocation25_spill]]  ;;  %s402_s28 = sand.u32 1, %s2507_s15  }
 0x10c   : > { %s3265_s18 = sld [smem:[#allocation30_spill]]  ;;  %s403_s17 = scalar_lea.sflag [#allocation7], %s402_s28 }
 0x111   : > { %s2868_s27 = sand.u32 1, %s3264_s30  }
 0x112   : > { %s1590_s3 = sshll.u32 %s2868_s27, 4  ;;  %p3266_p12 = scmp.ne.s32.totalorder %s3265_s18, 0 }
 0x113   : > { %s2871_s11 = scalar_lea.vmem [#allocation6], %s1590_s3 }
 0x114   : > { %2295 = dma.done.wait (%p3266_p12), %s403_s17, 256  }
 0x115   : > { %2297 = vsyncadd (%p3266_p12), %s403_s17, 4294967040  ;;  %s3267_s4 = sld [smem:[#allocation22_spill]]  ;;  %p3268_p13 = scmp.ne.s32.totalorder %s3258_s25, 0 }
 0x11b   : > { %s413_s2 = sand.u32 1, %s3267_s4  }
 0x11c   : > { %s2878_s6 = sshll.u32 %s413_s2, 3 }
 0x11d   : > { %s415_s24 = scalar_lea.vmem [#allocation8], %s2878_s6 }
 0x11e   : > { %2299 = dma.done.wait (%p3268_p13), %s403_s17, 128  }
 0x11f   : > { %2301 = vsyncadd (%p3268_p13), %s403_s17, 4294967168  ;;  %p3269_p3 = scmp.eq.s32.totalorder %s2507_s15, 0 }
 0x121   : > { %2303 = dma.done.wait (%p3269_p3), [#allocation10], 2432   ;;  %p3270_p10 = pmov %p3269_p3 }
 0x122   : > { %p3271_p11 = pmov %p3269_p3 }
 0x123   : > { %2305 = vsyncadd (%p3270_p10), [#allocation10], 4294964864 }
 0x124   : > { %2307 = dma.done.wait (%p3271_p11), [#allocation13], 1024   ;;  %p3272_p8 = pmov %p3269_p3 }
 0x125   : > { %s1595_s21 = sshll.u32 %s2868_s27, 5  ;;  %v2388_v0 = vmov 0   ;;  %v1951_v1 = vld [vmem:[#allocation9 + $0x4] ss:$8 sps:$4 sm:$0xff]   ;;  %v1953_v2 = vld [vmem:[#allocation9] ss:$8 sps:$4 sm:$0xff]   ;;  %v500_v19 = vlaneseq }
 0x126   : > { %2309 = vsyncadd (%p3272_p8), [#allocation13], 4294966272  ;;  %622 = vmatprep.mubr.bf16.mxu0 %v2388_v0  ;;  %785 = vmatprep.mubr.bf16.mxu1 %v2388_v0  ;;  %v1954_v3 = vld [vmem:[#allocation9 + $0x14] ss:$8 sps:$4 sm:$0xff]   ;;  %v1956_v4 = vld [vmem:[#allocation9 + $0x10] ss:$8 sps:$4 sm:$0xff]  }
 0x127   : > { %590 = vmatprep.subr.bf16.mxu0 %v1951_v1  ;;  %753 = vmatprep.subr.bf16.mxu1 %v1951_v1  ;;  %v1957_v5 = vld [vmem:[#allocation9 + $0x24] ss:$8 sps:$4 sm:$0xff]   ;;  %v1959_v6 = vld [vmem:[#allocation9 + $0x20] ss:$8 sps:$4 sm:$0xff]   ;;  %v1960_v7 = vld [vmem:[#allocation9 + $0x34] ss:$8 sps:$4 sm:$0xff]  }
 0x128   : > { %591 = vmatpush1.bf16.msra.mxu0 %v1953_v2  ;;  %754 = vmatpush1.bf16.msra.mxu1 %v1953_v2  ;;  %v1962_v8 = vld [vmem:[#allocation9 + $0x30] ss:$8 sps:$4 sm:$0xff]   ;;  %v1963_v9 = vld [vmem:[#allocation9 + $0x44] ss:$8 sps:$4 sm:$0xff]   ;;  %v1965_v10 = vld [vmem:[#allocation9 + $0x40] ss:$8 sps:$4 sm:$0xff]  }
 0x129   : > { %592 = vmatprep.subr.bf16.mxu0 %v1954_v3  ;;  %755 = vmatprep.subr.bf16.mxu1 %v1954_v3  ;;  %v1966_v11 = vld [vmem:[#allocation9 + $0x54] ss:$8 sps:$4 sm:$0xff]   ;;  %v1968_v12 = vld [vmem:[#allocation9 + $0x50] ss:$8 sps:$4 sm:$0xff]   ;;  %v1969_v13 = vld [vmem:[#allocation9 + $0x64] ss:$8 sps:$4 sm:$0xff]  }
 0x12a   : > { %v1971_v14 = vld [vmem:[#allocation9 + $0x60] ss:$8 sps:$4 sm:$0xff]   ;;  %v1972_v15 = vld [vmem:[#allocation9 + $0x74] ss:$8 sps:$4 sm:$0xff]   ;;  %v1974_v16 = vld [vmem:[#allocation9 + $0x70] ss:$8 sps:$4 sm:$0xff]  }
 0x12b   : > { %v481_v17 = vld [vmem:[%s397_s7 + $0x4] sm:$0xf]  ;;  %v644_v18 = vld [vmem:[%s415_s24] sm:$0xf]  ;;  %v2898_v20 = vshrl.u32 %v500_v19, 7  ;;  %s3273_s26 = sld [smem:[#allocation38_spill]] }
 0x12c   : > { %593 = vmatpush1.bf16.msra.mxu0 %v1956_v4  ;;  %756 = vmatpush1.bf16.msra.mxu1 %v1956_v4  ;;  %s3274_s5 = sld [smem:[#allocation26_spill]]  ;;  %s2921_s30 = scalar_lea.vmem [#allocation14], %s1595_s21 }
 0x12d   : > { %594 = vmatprep.subr.bf16.mxu0 %v1957_v5  ;;  %757 = vmatprep.subr.bf16.mxu1 %v1957_v5  ;;  %v2901_v21 = vsub.s32 1, %v2898_v20  ;;  %v2914_v42 = vsub.s32 0, %v2898_v20  ;;  %s2923_s18 = smov 0  }
 0x130   : > { %595 = vmatpush1.bf16.msra.mxu0 %v1959_v6  ;;  %758 = vmatpush1.bf16.msra.mxu1 %v1959_v6 }
 0x131   : > { %596 = vmatprep.subr.bf16.mxu0 %v1960_v7  ;;  %759 = vmatprep.subr.bf16.mxu1 %v1960_v7  ;;  %v498_v22 = vld [vmem:[%s3273_s26] sm:$0x3] }
 0x132   : > { %v661_v23 = vld [vmem:[%s3273_s26] sm:$0x3]  ;;  %v507_v24 = vrot.slane %v498_v22, %v2901_v21  ;;  %s1722_s22 = sshll.u32 %s3274_s5, 5  ;;  %p638_p1 = scmp.gt.s32.totalorder %s3274_s5, 0  ;;  %v503_v44 = vrot.slane %v498_v22, %v2914_v42 }
 0x133   : > { %v670_v25 = vrot.slane %v661_v23, %v2901_v21  ;;  %s1723_s10 = sadd.s32 32, %s1722_s22  ;;  %v666_v45 = vrot.slane %v661_v23, %v2914_v42 }
 0x134   : > { %597 = vmatpush1.bf16.msra.mxu0 %v1962_v8  ;;  %760 = vmatpush1.bf16.msra.mxu1 %v1962_v8  ;;  %s639_s7 = scalar_select %p638_p1, 1, 0  ;;  %v805_v43 = vstv %s1723_s10 }
 0x135   : > { %598 = vmatprep.subr.bf16.mxu0 %v1963_v9  ;;  %761 = vmatprep.subr.bf16.mxu1 %v1963_v9  ;;  %v806_v46 = vadd.s32 %v805_v43, %v2898_v20 }
 0x136   : > { %v640_v47 = vstv %s639_s7 }
 0x137   : > { %vm641_vm0 = vcmp.eq.s32.totalorder %v640_v47, 1  ;;  %vm807_vm1 = vcmp.lt.s32.totalorder %v806_v46, 80 }
 0x138   : > { %599 = vmatpush1.bf16.msra.mxu0 %v1965_v10  ;;  %762 = vmatpush1.bf16.msra.mxu1 %v1965_v10 }
 0x139   : > { %600 = vmatprep.subr.bf16.mxu0 %v1966_v11  ;;  %763 = vmatprep.subr.bf16.mxu1 %v1966_v11 }
 0x13c   : > { %601 = vmatpush1.bf16.msra.mxu0 %v1968_v12  ;;  %764 = vmatpush1.bf16.msra.mxu1 %v1968_v12 }
 0x13d   : > { %602 = vmatprep.subr.bf16.mxu0 %v1969_v13  ;;  %765 = vmatprep.subr.bf16.mxu1 %v1969_v13 }
 0x140   : > { %603 = vmatpush1.bf16.msra.mxu0 %v1971_v14  ;;  %766 = vmatpush1.bf16.msra.mxu1 %v1971_v14 }
 0x141   : > { %604 = vmatprep.subr.bf16.mxu0 %v1972_v15  ;;  %767 = vmatprep.subr.bf16.mxu1 %v1972_v15 }
 0x144   : > { %605 = vmatpush1.bf16.msra.mxu0 %v1974_v16  ;;  %768 = vmatpush1.bf16.msra.mxu1 %v1974_v16 }
 0x147   : > { %623 = vmatmul.mubr.bf16.vlgmr.msra.gmra.mrb[0].mxu0 %v481_v17  ;;  %786 = vmatmul.mubr.bf16.vlgmr.msra.gmra.mrb[0].mxu1 %v644_v18 }
 0x21a   : > { %v624_v26 = vpop.f32.mrb[0].mxu0  ;;  %v787_v27 = vpop.f32.mrb[0].mxu1 }
 0x21b   : > { %v626_v28 = vpop.f32.mrb[1].mxu0  ;;  %v789_v29 = vpop.f32.mrb[1].mxu1  ;;  %v625_v48 = vadd.f32 %v624_v26, %v503_v44  ;;  %v788_v50 = vadd.f32 %v787_v27, %v666_v45 }
 0x21c   : > { %v627_v30 = vadd.f32 %v626_v28, %v507_v24  ;;  %v790_v31 = vadd.f32 %v789_v29, %v670_v25  ;;  %v628_v32 = vpop.f32.mrb[2].mxu0  ;;  %v791_v33 = vpop.f32.mrb[2].mxu1 }
 0x21d   : > { %v629_v34 = vpop.f32.mrb[3].mxu0  ;;  %v792_v35 = vpop.f32.mrb[3].mxu1 }
 0x21e   : > { %v1612_v36 = vmul.f32 -1.442695, %v627_v30  ;;  %v1629_v37 = vmul.f32 -1.442695, %v790_v31 }
 0x220   : > { %1975 = vpow2.f32 %v1612_v36 }
 0x221   : > { %1977 = vpow2.f32 %v1629_v37 }
 0x22a   : > { %v1976_v38 = vpop.eup %1975 }
 0x22b   : > { %v1978_v39 = vpop.eup %1977  ;;  %v634_v40 = vadd.f32 1.0, %v1976_v38 }
 0x22c   : > { %v797_v41 = vadd.f32 1.0, %v1978_v39 }
 0x22d   : > { %1979 = vrcp.f32 %v634_v40 }
 0x22e   : > { %1981 = vrcp.f32 %v797_v41 }
 0x237   : > { %v1980_v49 = vpop.eup %1979 }
 0x238   : > { %v1982_v51 = vpop.eup %1981  ;;  %v637_v52 = vmul.f32 %v1980_v49, %v625_v48 }
 0x239   : > { %v800_v53 = vmul.f32 %v1982_v51, %v788_v50 }
 0x23a   : > { %v642_v54 = vsel %vm641_vm0, %v637_v52, 0.0 }
 0x23b   : > { %643 = vst [vmem:[#allocation2] sm:$0xff] %v642_v54  ;;  %v810_v55 = vsel %vm807_vm1, %v800_v53, 0.0 }
 0x23c   : > { %811 = vst [vmem:[#allocation2 + $0x28] sm:$0xff] %v810_v55 }
 0x23d LB: >> { %v1983_v56 = vld [vmem:[#allocation9 + $0x4] ss:$8 sps:$4 sm:$0xff]   ;;  %v1985_v57 = vld [vmem:[#allocation9] ss:$8 sps:$4 sm:$0xff]   ;;  %v2389_v58 = vmov 0   ;;  %s1631_s28 = sshll.u32 %s2372_s18, 4  ;;  %s2372_s18 = sphi %s2923_s18, %s817_s18  }
 0x23e   : >> { %971 = vmatprep.mubr.bf16.mxu0 %v2389_v58  ;;  %939 = vmatprep.subr.bf16.mxu0 %v1983_v56  ;;  %v1986_v59 = vld [vmem:[#allocation9 + $0x14] ss:$8 sps:$4 sm:$0xff]   ;;  %v1988_v60 = vld [vmem:[#allocation9 + $0x10] ss:$8 sps:$4 sm:$0xff]   ;;  %s819_s3 = sshra.s32 %s1631_s28, 3  ;;  %s3275_s24 = sld [smem:[#allocation38_spill]] }
 0x23f   : >> { %940 = vmatpush1.bf16.msra.mxu0 %v1985_v57  ;;  %v1989_v61 = vld [vmem:[#allocation9 + $0x24] ss:$8 sps:$4 sm:$0xff]   ;;  %s1632_s17 = sshll.u32 %s819_s3, 2  ;;  %v1991_v62 = vld [vmem:[#allocation9 + $0x20] ss:$8 sps:$4 sm:$0xff]   ;;  %s1413_s21 = scalar_lea.vmem [#allocation2], %s1631_s28 }
 0x240   : >> { %941 = vmatprep.subr.bf16.mxu0 %v1986_v59  ;;  %v1992_v63 = vld [vmem:[#allocation9 + $0x34] ss:$8 sps:$4 sm:$0xff]   ;;  %s822_s4 = scalar_lea.vmem %s2871_s11, %s1632_s17 [#allocation6]  ;;  %v1994_v0 = vld [vmem:[#allocation9 + $0x30] ss:$8 sps:$4 sm:$0xff]   ;;  %v1995_v1 = vld [vmem:[#allocation9 + $0x44] ss:$8 sps:$4 sm:$0xff]  }
 0x241   : >> { %v1997_v2 = vld [vmem:[#allocation9 + $0x40] ss:$8 sps:$4 sm:$0xff]   ;;  %v1998_v3 = vld [vmem:[#allocation9 + $0x54] ss:$8 sps:$4 sm:$0xff]   ;;  %v2000_v4 = vld [vmem:[#allocation9 + $0x50] ss:$8 sps:$4 sm:$0xff]  }
 0x242   : >> { %v2001_v5 = vld [vmem:[#allocation9 + $0x64] ss:$8 sps:$4 sm:$0xff]   ;;  %v2003_v6 = vld [vmem:[#allocation9 + $0x60] ss:$8 sps:$4 sm:$0xff]   ;;  %v2004_v7 = vld [vmem:[#allocation9 + $0x74] ss:$8 sps:$4 sm:$0xff]  }
 0x243   : >> { %942 = vmatpush1.bf16.msra.mxu0 %v1988_v60  ;;  %v2006_v8 = vld [vmem:[#allocation9 + $0x70] ss:$8 sps:$4 sm:$0xff]   ;;  %s817_s18 = sadd.s32 1, %s2372_s18  }
 0x244   : >> { %943 = vmatprep.subr.bf16.mxu0 %v1989_v61  ;;  %v2007_v9 = vld [vmem:[%s822_s4] sm:$0xff]   ;;  %p814_p6 = scmp.ge.s32.totalorder %s817_s18, 2  }
 0x245   : >> { %v841_v10 = vld [vmem:[%s3275_s24] sm:$0x3]  ;;  %s3276_s15 = sld [smem:[#allocation26_spill]] (%p814_p6) }
 0x246   : >> { %v850_v11 = vrot.slane %v841_v10, %v2901_v21  ;;  %v846_v26 = vrot.slane %v841_v10, %v2914_v42 }
 0x247   : >> { %944 = vmatpush1.bf16.msra.mxu0 %v1991_v62 }
 0x248   : >> { %945 = vmatprep.subr.bf16.mxu0 %v1992_v63 }
 0x24b   : >> { %946 = vmatpush1.bf16.msra.mxu0 %v1994_v0  ;;  %p1655_p4 = scmp.ne.s32.totalorder (%p814_p6), %s3276_s15, 2 }
 0x24c   : >> { %947 = vmatprep.subr.bf16.mxu0 %v1995_v1 }
 0x24f   : >> { %948 = vmatpush1.bf16.msra.mxu0 %v1997_v2 }
 0x250   : >> { %949 = vmatprep.subr.bf16.mxu0 %v1998_v3 }
 0x253   : >> { %950 = vmatpush1.bf16.msra.mxu0 %v2000_v4 }
 0x254   : >> { %951 = vmatprep.subr.bf16.mxu0 %v2001_v5 }
 0x257   : >> { %952 = vmatpush1.bf16.msra.mxu0 %v2003_v6 }
 0x258   : >> { %953 = vmatprep.subr.bf16.mxu0 %v2004_v7 }
 0x25b   : >> { %954 = vmatpush1.bf16.msra.mxu0 %v2006_v8 }
 0x25e   : >> { %972 = vmatmul.mubr.bf16.vlgmr.msra.gmra.mrb[0].mxu0 %v2007_v9 }
 0x331   : >> { %v973_v12 = vpop.f32.mrb[0].mxu0 }
 0x332   : >> { %v975_v13 = vpop.f32.mrb[1].mxu0  ;;  %v974_v27 = vadd.f32 %v973_v12, %v846_v26 }
 0x333   : >> { %v976_v14 = vadd.f32 %v975_v13, %v850_v11  ;;  %v977_v15 = vpop.f32.mrb[2].mxu0 }
 0x334   : >> { %v979_v16 = vpop.f32.mrb[3].mxu0  ;;  %v978_v30 = vadd.f32 %v977_v15, %v846_v26 }
 0x335   : >> { %v1650_v17 = vmul.f32 -1.442695, %v976_v14  ;;  %v980_v18 = vadd.f32 %v979_v16, %v850_v11 }
 0x337   : >> { %2008 = vpow2.f32 %v1650_v17  ;;  %v1651_v19 = vmul.f32 -1.442695, %v980_v18 }
 0x339   : >> { %2010 = vpow2.f32 %v1651_v19 }
 0x341   : >> { %v2009_v22 = vpop.eup %2008 }
 0x342   : >> { %v988_v23 = vadd.f32 1.0, %v2009_v22 }
 0x343   : >> { %v2011_v24 = vpop.eup %2010 }
 0x344   : >> { %2012 = vrcp.f32 %v988_v23  ;;  %v989_v25 = vadd.f32 1.0, %v2011_v24 }
 0x346   : >> { %2014 = vrcp.f32 %v989_v25 }
 0x34d   : > { %816 = sbr.rel (!%p814_p6) target bundleno = 573 (0x23d), region = 165 }
 0x34e   : >> { %v2013_v28 = vpop.eup %2012 }
 0x34f   : >> { %v994_v29 = vmul.f32 %v2013_v28, %v974_v27 }
 0x350   : >> { %v2015_v31 = vpop.eup %2014 }
 0x351   : >> { %1653 = vst [vmem:[%s1413_s21 + $0x8] sm:$0xff] %v994_v29  ;;  %v995_v32 = vmul.f32 %v2015_v31, %v978_v30 }
 0x353   : >> { %1654 = vst [vmem:[%s1413_s21 + $0x10] sm:$0xff] %v995_v32 }
 0x354   : > { %1003 = sbr.rel (%p1655_p4) target bundleno = 859 (0x35b), region = 83  ;;  %v2390_v33 = vmov (!%p1655_p4), 0.0  }
 0x355   : > { %1004 = vst [vmem:[#allocation2 + $0x18] sm:$0xff] (!%p1655_p4), %v2390_v33  ;;  %1005 = vst [vmem:[#allocation2 + $0x20] sm:$0xff] (!%p1655_p4), %v2390_v33 }
 0x35b PF: > { %v2943_v34 = vld [vmem:[#allocation11] sm:$0xff]  ;;  %v2945_v35 = vld [vmem:[#allocation11 + $0x8] sm:$0xff]  ;;  %v2947_v36 = vld [vmem:[#allocation11 + $0x10] ss:$0 sm:$0xff]  ;;  %s2949_s25 = smov 0  }
 0x35c LB: >> { %v2016_v37 = vld [vmem:[#allocation12] sm:$0xff]   ;;  %v2391_v38 = vmov 0.0   ;;  %v2017_v39 = vld [vmem:[#allocation12 + $0x8] sm:$0xff]   ;;  %vm2392_vm2 = vmmov 0   ;;  %s1656_s11 = sshll.u32 %s2376_s25, 4  ;;  %v1046_v40 = vsub.s32 2, %v2898_v20  ;;  %v1023_v41 = vrot.slane %v2943_v34, %v2914_v42  ;;  %s2376_s25 = sphi %s2949_s25, %s1014_s25  }
 0x35d   : >> { %1733 = vmatprep.subr.bf16.mxu0 %v2391_v38  ;;  %1749 = vmatprep.mubr.msk.bf16.mxu0 %vm2392_vm2, %v2391_v38  ;;  %v1035_v43 = vrot.slane %v2943_v34, %v2901_v21  ;;  %v1058_v44 = vsub.s32 3, %v2898_v20  ;;  %v2018_v45 = vld [vmem:[#allocation12 + $0x10] sm:$0xff]   ;;  %v1070_v47 = vsub.s32 4, %v2898_v20  ;;  %v1082_v49 = vsub.s32 5, %v2898_v20  ;;  %v2019_v50 = vld [vmem:[#allocation12 + $0x18] sm:$0xff]   ;;  %s2975_s26 = scalar_lea.vmem [#allocation2], %s1656_s11  ;;  %s1314_s19 = scalar_lea.vmem %s2921_s30, %s1656_s11 [#allocation14] }
 0x35e   : >> { %1734 = vmatpush3.bf16.msra.mxu0 %v2016_v37  ;;  %v1047_v46 = vrot.slane %v2943_v34, %v1046_v40  ;;  %v1658_v51 = vld [vmem:[%s2975_s26 + $0x1] sm:$0xff]  ;;  %v1659_v52 = vld [vmem:[%s2975_s26 + $0x9] sm:$0xff]  ;;  %v1094_v61 = vsub.s32 6, %v2898_v20  ;;  %v1106_v8 = vsub.s32 7, %v2898_v20  ;;  %v1119_v32 = vrot.slane %v2945_v35, %v2914_v42  ;;  %s1014_s25 = sadd.s32 1, %s2376_s25  }
 0x35f   : >> { %1735 = vmatprep.subr.bf16.mxu0 %v2391_v38  ;;  %v1059_v48 = vrot.slane %v2943_v34, %v1058_v44  ;;  %v1661_v53 = vld [vmem:[%s2975_s26 + $0x2] sm:$0xff]  ;;  %v1071_v54 = vrot.slane %v2943_v34, %v1070_v47  ;;  %v1024_v55 = vmul.f32 %v1658_v51, %v1023_v41  ;;  %v1025_v56 = vmul.f32 %v1659_v52, %v1023_v41  ;;  %v2984_v57 = vld [vmem:[%s2975_s26 + $0xa] sm:$0xff]  ;;  %p1011_p5 = scmp.ge.s32.totalorder %s1014_s25, 2  }
 0x360   : >> { %v1036_v58 = vmul.f32 %v1661_v53, %v1035_v43  ;;  %v1664_v59 = vld [vmem:[%s2975_s26 + $0x3] sm:$0xff]  ;;  %v2988_v60 = vld [vmem:[%s2975_s26 + $0xb] sm:$0xff]  ;;  %v1037_v62 = vmul.f32 %v2984_v57, %v1035_v43  ;;  %v1083_v7 = vrot.slane %v2943_v34, %v1082_v49  ;;  %v1095_v15 = vrot.slane %v2943_v34, %v1094_v61  ;;  %s3277_s20 = sld [smem:[#allocation26_spill]] (%p1011_p5)  ;;  %s3278_s5 = sld [smem:[#allocation27_spill]] (%p1011_p5) }
 0x361   : >> { %v1048_v63 = vmul.f32 %v1664_v59, %v1047_v46  ;;  %v1049_v0 = vmul.f32 %v2988_v60, %v1047_v46  ;;  %v1667_v1 = vld [vmem:[%s2975_s26 + $0x4] sm:$0xff]  ;;  %v2995_v2 = vld [vmem:[%s2975_s26 + $0xc] sm:$0xff]  ;;  %v1107_v25 = vrot.slane %v2943_v34, %v1106_v8  ;;  %v1131_v46 = vrot.slane %v2945_v35, %v2901_v21  ;;  %s3279_s22 = sld [smem:[#allocation31_spill]] (%p1011_p5)  ;;  %s1333_s18 = sshll.u32 (%p1011_p5), %s2921_s30, 4  ;;  %s3076_s18 = int_to_ptr.vmem [resolvable:$true] %s1333_s18 }
 0x362   : >> { %1736 = vmatpush3.bf16.msra.mxu0 %v2017_v39  ;;  %v1670_v3 = vld [vmem:[%s2975_s26 + $0x5] sm:$0xff]  ;;  %v1038_v4 = vadd.f32 %v1036_v58, %v1024_v55  ;;  %v1060_v5 = vmul.f32 %v1667_v1, %v1059_v48  ;;  %v3000_v6 = vld [vmem:[%s2975_s26 + $0xd] sm:$0xff]  ;;  %v1039_v9 = vadd.f32 %v1037_v62, %v1025_v56  ;;  %v1061_v10 = vmul.f32 %v2995_v2, %v1059_v48  ;;  %v2022_v56 = vld [vmem:[#allocation12 + $0x30] sm:$0xff]   ;;  %s3280_s2 = sld [smem:[#allocation41_spill]] (%p1011_p5)  ;;  %s1318_s24 = scalar_lea.sflag (%p1011_p5), [#allocation5], %s2868_s27 }
 0x363   : >> { %1737 = vmatprep.subr.bf16.mxu0 %v2391_v38  ;;  %v1673_v11 = vld [vmem:[%s2975_s26 + $0x6] sm:$0xff]  ;;  %v1072_v13 = vmul.f32 %v1670_v3, %v1071_v54  ;;  %v3009_v14 = vld [vmem:[%s2975_s26 + $0xe] sm:$0xff]  ;;  %v1073_v18 = vmul.f32 %v3000_v6, %v1071_v54  ;;  %v1120_v53 = vmul.f32 %v1659_v52, %v1119_v32  ;;  %v1143_v55 = vrot.slane %v2945_v35, %v1046_v40  ;;  %s2198_s21 = scalar_lea.vmem (%p1011_p5), %s3076_s18, 512  ;;  %s2393_s15 = smov (%p1011_p5), [#allocation14]  }
 0x364   : >> { %v1050_v12 = vadd.f32 %v1048_v63, %v1038_v4  ;;  %v2020_v16 = vld [vmem:[#allocation12 + $0x20] sm:$0xff]   ;;  %v1051_v17 = vadd.f32 %v1049_v0, %v1039_v9  ;;  %v1084_v23 = vmul.f32 %v1673_v11, %v1083_v7  ;;  %v1085_v27 = vmul.f32 %v3009_v14, %v1083_v7  ;;  %v1680_v31 = vld [vmem:[%s2975_s26 + $0x10] sm:$0xff]  ;;  %v2023_v9 = vld [vmem:[#allocation12 + $0x38] sm:$0xff]   ;;  %p2199_p2 = scmp.ne.s32.totalorder (%p1011_p5), %s3076_s18, %s2198_s21  ;;  %s2202_s30 = sshll.u32 (%p1011_p5), %s2393_s15, 4  ;;  %s2203_s30 = int_to_ptr.vmem [resolvable:$false] %s2202_s30 }
 0x365   : >> { %v1676_v19 = vld [vmem:[%s2975_s26 + $0x7] sm:$0xff]  ;;  %v3018_v24 = vld [vmem:[%s2975_s26 + $0xf] sm:$0xff]  ;;  %v1132_v63 = vmul.f32 %v2984_v57, %v1131_v46  ;;  %v1155_v52 = vrot.slane %v2945_v35, %v1058_v44  ;;  %v1144_v40 = vmul.f32 %v2988_v60, %v1143_v55  ;;  %v1167_v7 = vrot.slane %v2945_v35, %v1070_v47  ;;  %s2204_s25 = scalar_lea.vmem (%p1011_p5), %s2203_s30, 1024  ;;  %p2205_p12 = scmp.lt.s32.totalorder (%p1011_p5), %s3076_s18, %s2203_s30 }
 0x366   : >> { %1738 = vmatpush3.bf16.msra.mxu0 %v2018_v45  ;;  %v1062_v22 = vadd.f32 %v1060_v5, %v1050_v12  ;;  %v1063_v26 = vadd.f32 %v1061_v10, %v1051_v17  ;;  %v1679_v28 = vld [vmem:[%s2975_s26 + $0x8] sm:$0xff]  ;;  %v1096_v30 = vmul.f32 %v1676_v19, %v1095_v15  ;;  %v2021_v33 = vld [vmem:[#allocation12 + $0x28] sm:$0xff]   ;;  %v1097_v39 = vmul.f32 %v3018_v24, %v1095_v15  ;;  %s1712_s10 = sshll.u32 (%p1011_p5), %s3277_s20, 2  ;;  %s1756_s7 = smul.u32 (%p1011_p5), 12, %s3278_s5 }
 0x367   : >> { %1739 = vmatprep.subr.bf16.mxu0 %v2391_v38  ;;  %v1108_v43 = vmul.f32 %v1679_v28, %v1107_v25  ;;  %v1683_v45 = vld [vmem:[%s2975_s26 + $0x11] sm:$0xff]  ;;  %v1156_v44 = vmul.f32 %v2995_v2, %v1155_v52  ;;  %v1179_v60 = vrot.slane %v2945_v35, %v1082_v49  ;;  %v1168_v47 = vmul.f32 %v3000_v6, %v1167_v7  ;;  %p3281_p0 = scmp.ne.s32.totalorder (%p1011_p5), %s3279_s22, 0  ;;  %p2206_p13 = scmp.lt.s32.totalorder (%p1011_p5), %s2204_s25, %s2198_s21 }
 0x368   : >> { %v1074_v29 = vadd.f32 %v1072_v13, %v1062_v22  ;;  %v1075_v37 = vadd.f32 %v1073_v18, %v1063_v26  ;;  %v1686_v54 = vld [vmem:[%s2975_s26 + $0x12] sm:$0xff]  ;;  %v1121_v59 = vmul.f32 %v1683_v45, %v1119_v32  ;;  %v1191_v18 = vrot.slane %v2945_v35, %v1094_v61  ;;  %s1330_s28 = sadd.s32 (%p1011_p5), %s1756_s7, %s1712_s10 }
 0x369   : >> { %v1689_v0 = vld [vmem:[%s2975_s26 + $0x13] sm:$0xff]  ;;  %v1133_v3 = vmul.f32 %v1686_v54, %v1131_v46  ;;  %v1180_v2 = vmul.f32 %v3009_v14, %v1179_v60  ;;  %v1199_v61 = vrot.slane %v2945_v35, %v1106_v8  ;;  %s1713_s3 = sshll.u32 (%p1011_p5), %s1330_s28, 7  ;;  %p2200_p7 = pnand (%p1011_p5), %p2199_p2, %p3281_p0 }
 0x36a   : >> { %1740 = vmatpush3.bf16.msra.mxu0 %v2019_v50  ;;  %v1086_v41 = vadd.f32 %v1084_v23, %v1074_v29  ;;  %v1087_v48 = vadd.f32 %v1085_v27, %v1075_v37  ;;  %v1109_v50 = vmul.f32 %v1680_v31, %v1107_v25  ;;  %v1692_v5 = vld [vmem:[%s2975_s26 + $0x14] sm:$0xff]  ;;  %v1145_v10 = vmul.f32 %v1689_v0, %v1143_v55  ;;  %s3081_s6 = scalar_lea.hbm (%p1011_p5), %s3280_s2, %s1713_s3  ;;  %p2207_p3 = por (%p1011_p5), %p2206_p13, %p2205_p12 }
 0x36b   : >> { %1741 = vmatprep.subr.bf16.mxu0 %v2391_v38  ;;  %v1695_v12 = vld [vmem:[%s2975_s26 + $0x15] sm:$0xff]  ;;  %v1157_v15 = vmul.f32 %v1692_v5, %v1155_v52  ;;  %v1192_v27 = vmul.f32 %v3018_v24, %v1191_v18  ;;  %p2201_p9 = pneg (%p1011_p5), %p2200_p7 }
 0x36c   : >> { %v1098_v51 = vadd.f32 %v1096_v30, %v1086_v41  ;;  %v1099_v58 = vadd.f32 %v1097_v39, %v1087_v48  ;;  %v1698_v17 = vld [vmem:[%s2975_s26 + $0x16] sm:$0xff]  ;;  %v1169_v19 = vmul.f32 %v1695_v12, %v1167_v7 }
 0x36d   : >> { %v1701_v23 = vld [vmem:[%s2975_s26 + $0x17] sm:$0xff]  ;;  %v1181_v26 = vmul.f32 %v1698_v17, %v1179_v60  ;;  %p2208_p10 = pnand (%p1011_p5), %p2207_p3, %p2201_p9 }
 0x36e   : >> { %1742 = vmatpush3.bf16.msra.mxu0 %v2020_v16  ;;  %v1110_v62 = vadd.f32 %v1108_v43, %v1098_v51  ;;  %v1111_v1 = vadd.f32 %v1109_v50, %v1099_v58  ;;  %v1193_v28 = vmul.f32 %v1701_v23, %v1191_v18 }
 0x36f   : >> { %1743 = vmatprep.subr.bf16.mxu0 %v2391_v38 }
 0x370   : >> { %v1122_v4 = vadd.f32 %v1120_v53, %v1110_v62  ;;  %v1123_v57 = vadd.f32 %v1121_v59, %v1111_v1 }
 0x372   : >> { %1744 = vmatpush3.bf16.msra.mxu0 %v2021_v33  ;;  %v1134_v11 = vadd.f32 %v1132_v63, %v1122_v4  ;;  %v1135_v13 = vadd.f32 %v1133_v3, %v1123_v57 }
 0x373   : >> { %1745 = vmatprep.subr.bf16.mxu0 %v2391_v38 }
 0x374   : >> { %v1146_v16 = vadd.f32 %v1144_v40, %v1134_v11 }
 0x376   : >> { %1746 = vmatpush3.bf16.msra.mxu0 %v2022_v56  ;;  %v1158_v22 = vadd.f32 %v1156_v44, %v1146_v16 }
 0x377   : >> { %1747 = vmatprep.subr.bf16.mxu0 %v2391_v38  ;;  %v1147_v38 = vadd.f32 %v1145_v10, %v1135_v13 }
 0x378   : >> { %v1170_v49 = vadd.f32 %v1168_v47, %v1158_v22 }
 0x379   : >> { %v1159_v25 = vadd.f32 %v1157_v15, %v1147_v38 }
 0x37a   : >> { %1748 = vmatpush3.bf16.msra.mxu0 %v2023_v9  ;;  %v1182_v29 = vadd.f32 %v1180_v2, %v1170_v49 }
 0x37b   : >> { %v1171_v6 = vadd.f32 %v1169_v19, %v1159_v25 }
 0x37c   : >> { %v1194_v31 = vadd.f32 %v1192_v27, %v1182_v29 }
 0x37d   : >> { %v1183_v30 = vadd.f32 %v1181_v26, %v1171_v6 }
 0x37e   : >> { %v1200_v33 = vadd.f32 %v1199_v61, %v1194_v31 }
 0x37f   : >> { %v1195_v32 = vadd.f32 %v1193_v28, %v1183_v30 }
 0x380   : >> { %v1202_v37 = vmax.f32 %v1200_v33, 0.0 }
 0x381   : >> { %v1201_v14 = vadd.f32 %v1199_v61, %v1195_v32 }
 0x383   : >> { %v1203_v39 = vmax.f32 %v1201_v14, 0.0 }
 0x385   : >> { %v1204_v41 = vpack.c.bf16 %v1203_v39, %v1202_v37 }
 0x387   : >> { %1750 = vmatmul.mubr.bf16.vlgmr.msra.gmra.mrb[0].mxu0 %v1204_v41 }
 0x459   : > { %1013 = sbr.rel (!%p1011_p5) target bundleno = 860 (0x35c), region = 176 }
 0x45a   : >> { %v1307_v43 = vpop.f32.mrb[0].mxu0 }
 0x45b   : >> { %v1308_v24 = vadd.f32 %v2947_v36, %v1307_v43  ;;  %v1751_v45 = vpop.f32.mrb[1].mxu0 }
 0x45c   : >> { %v1310_v46 = vpop.f32.mrb[2].mxu0 }
 0x45d   : >> { %1315 = vst [vmem:[%s1314_s19] sm:$0xff] %v1308_v24  ;;  %v1311_v48 = vadd.f32 %v2947_v36, %v1310_v46  ;;  %v1752_v8 = vpop.f32.mrb[3].mxu0 }
 0x45f   : >> { %1316 = vst [vmem:[%s1314_s19 + $0x8] sm:$0xff] %v1311_v48 }
 0x460   : > { %2211 = shalt.err (!%p2208_p10)
}
 0x461   : > { %s2212_s11 = scalar_lea.hbm %s3081_s6, 512  ;;  %s2216_s20 = scalar_lea.hbm %s3280_s2, 3072 }
 0x462   : > { %p2213_p11 = scmp.ne.s32.totalorder %s3081_s6, %s2212_s11  ;;  %p2217_p6 = scmp.lt.u32.totalorder %s3081_s6, %s3280_s2 }
 0x463   : > { %p2218_p4 = scmp.lt.u32.totalorder %s2216_s20, %s2212_s11  ;;  %p2220_p2 = scmp.lt.u32.totalorder %s2212_s11, %s3081_s6 }
 0x464   : > { %p2214_p8 = pnand %p2213_p11, %p3281_p0 }
 0x465   : > { %p2219_p5 = por %p2218_p4, %p2217_p6 }
 0x466   : > { %p2215_p1 = pneg %p2214_p8 }
 0x467   : > { %p2221_p7 = por %p2220_p2, %p2219_p5 }
 0x469   : > { %p2222_p9 = pnand %p2221_p7, %p2215_p1 }
 0x46b   : > { %2225 = shalt.err (!%p2222_p9)
}
 0x46c   : > { %s2394_s7 = smov 128   ;;  %s2395_s28 = smov 8  }
 0x46d   : > { %1775 = dma.vmem_to_hbm [thread:$0]  (%p3281_p0), %s3076_s18, 512, %s3081_s6, %s1318_s24, %s2394_s7, %s2394_s7, %s2395_s28  }
 0x46e PF: > { %s3282_s3 = sld [smem:[#allocation24_spill]]  ;;  %s3283_s17 = sld [smem:[#allocation32_spill]] }
 0x46f   : > { %p1808_p12 = scmp.ge.s32.totalorder %s2368_s14, 2 }
 0x474   : > { %s1348_s4 = sand.u32 1, %s3282_s3   ;;  %p3284_p13 = scmp.ne.s32.totalorder %s3283_s17, 0 }
 0x475   : > { %s1349_s21 = scalar_lea.sflag [#allocation5], %s1348_s4 }
 0x476   : > { %p1798_p3 = pnand %p1808_p12, %p3284_p13 }
 0x478   : > { %2311 = dma.done.wait (!%p1798_p3), %s1349_s21, 512  }
 0x479   : > { %2313 = vsyncadd (!%p1798_p3), %s1349_s21, 4294966784  ;;  %s28_s14 = sadd.s32 1, %s2368_s14   ;;  %s3286_s24 = sld [smem:[#allocation22_spill]] }
 0x47a   : > { %p3112_p10 = scmp.ge.s32.totalorder %s28_s14, 8   ;;  %s3287_s25 = sld [smem:[#allocation23_spill]] }
 0x47b   : > { %s3288_s27 = sld [smem:[#allocation25_spill]]  ;;  %s3289_s22 = sld [smem:[#allocation29_spill]] }
 0x47c   : > { %s3290_s18 = sld [smem:[#allocation33_spill]]  ;;  %s3291_s26 = smov %s3316_s23 }
 0x47d   : > { %s3292_s28 = smov %s2336_s29  ;;  %s3293_s29 = smov %s2732_s1 }
 0x47e   : > { %s3294_s30 = smov %s2344_s8  ;;  %s3295_s8 = smov %s2348_s9 }
 0x47f   : > { %s3296_s9 = smov %s2735_s16  ;;  %s3297_s10 = smov %s2360_s12 }
 0x480   : > { %s3298_s11 = smov %s2364_s13  ;;  %27 = sbr.rel (!%p3112_p10) target bundleno = 23 (0x17), region = 187 }
 0x481   : > { %s3299_s12 = smov %s3289_s22 }
 0x482   : > { %s3300_s13 = smov %s3290_s18 }
 0x487   :  { %1354 = vsyncpa [#allocation4], 1 }
 0x488   :  { %1356 = vsyncpa [#allocation4 + $0x1], 1 }
 0x489   :  { %1357 = vsyncpa [#allocation7], 1 }
 0x48a   :  { %1359 = vsyncpa [#allocation7 + $0x1], 1 }
 0x48b   :  { %1360 = vsyncpa [#allocation10], 1 }
 0x48c   :  { %1361 = vsyncpa [#allocation13], 1 }
 0x48d   :  { %1362 = vsyncpa [#allocation5], 1 }
 0x48e   :  { %1364 = vsyncpa [#allocation5 + $0x1], 1 }

</bundles_post_ra>
